<compile_context>
chip_gen: v7x
topology: tpu7x:2x2x1
jax: 0.10.0
libtpu: 0.0.40
codegen_flags: <defaults>
</compile_context>

<pallas_src>
import math
from functools import partial

import jax
import jax.numpy as jnp
from jax.experimental import pallas as pl
from jax.experimental.pallas import tpu as pltpu


# --------------------------- VMEM budget (per generation) --------------------

def _vmem_budget_bytes():
    """~75% of physical VMEM: 96 MiB on v5e/v6e (128 MiB), 48 MiB on v7x (64 MiB/TC).
    Conservative 48 MiB fallback if the hardware query is unavailable."""
    cap = None
    try:
        info = pltpu.get_tpu_info()
        cap = getattr(info, "vmem_capacity_bytes", None)
    except Exception:
        cap = None
    if not cap:
        cap = 64 * 1024 * 1024
    return int(cap) * 3 // 4


_VMEM_LIMIT = _vmem_budget_bytes()
_TILE_BUDGET = int(_VMEM_LIMIT * 0.85)   # headroom for semaphores / metadata


# --------------------------- Tile selection ----------------------------------

def _largest_divisor_tile(dim, target, align):
    """Largest multiple of `align` that divides `dim` and is <= target.
    Falls back to the largest plain divisor <= target, else the full dim
    (avoids degenerate tiny tiles)."""
    if dim <= target:
        return dim
    best = None
    for t in range(min(target, dim), 0, -1):
        if dim % t == 0:
            if t % align == 0:
                return t
            if best is None:
                best = t
    return best or dim


def _dense_tiles(M, K, N, budget):
    """Full-K tiles; tn starts at full N, tm at 512 (16-aligned for bf16 packing);
    shrink only if the double-buffered working set would exceed the VMEM budget."""
    tm = _largest_divisor_tile(M, 512, 16)
    tn = N

    def working(tm_, tn_):
        # double-buffered: x (tm,K) bf16, w (K,tn) bf16, bias (1,tn) f32, out (tm,tn) bf16
        return 2 * (tm_ * K * 2 + K * tn_ * 2 + tn_ * 4 + tm_ * tn_ * 2)

    while working(tm, tn) > budget and tn > 128:
        tn = _largest_divisor_tile(N, max(128, tn // 2), 128)
    while working(tm, tn) > budget and tm > 16:
        tm = _largest_divisor_tile(M, max(16, tm // 2), 16)
    return tm, tn


def _ln_row_tile(M, K, N, budget):
    tm = _largest_divisor_tile(M, 512, 16)

    def working(tm_):
        # x (tm,K) bf16, w (K,N) bf16, bias/gamma/beta (1,N) f32, res+out (tm,N) bf16
        return 2 * (tm_ * K * 2 + K * N * 2 + 3 * N * 4 + 2 * tm_ * N * 2)

    while working(tm) > budget and tm > 16:
        tm = _largest_divisor_tile(M, max(16, tm // 2), 16)
    return tm


# --------------------------- Pallas kernels ---------------------------------

def _dense_kernel(x_ref, w_ref, b_ref, o_ref, *, activation):
    # Full-K block: single MXU pass, f32 accumulation via preferred_element_type.
    y = jnp.dot(x_ref[...], w_ref[...], preferred_element_type=jnp.float32)
    y = y + b_ref[...].astype(jnp.float32)
    if activation == "gelu":
        # TODO(synk): HF BERT default is exact (erf) GELU; tanh approximation used here.
        y = 0.5 * y * (1.0 + jnp.tanh(
            0.7978845608028654 * (y + 0.044715 * y * y * y)))
    o_ref[...] = y.astype(o_ref.dtype)


def dense(x, w, b, activation=None, out_dtype=None):
    M, K = x.shape
    N = w.shape[1]
    out_dtype = out_dtype or x.dtype
    tm, tn = _dense_tiles(M, K, N, _TILE_BUDGET)
    return pl.pallas_call(
        partial(_dense_kernel, activation=activation),
        out_shape=jax.ShapeDtypeStruct((M, N), out_dtype),
        grid=(M // tm, N // tn),
        in_specs=[
            pl.BlockSpec((tm, K), lambda i, j: (i, 0)),
            pl.BlockSpec((K, tn), lambda i, j: (0, j)),
            pl.BlockSpec((1, tn), lambda i, j: (0, j)),
        ],
        out_specs=pl.BlockSpec((tm, tn), lambda i, j: (i, j)),
        compiler_params=pltpu.CompilerParams(
            dimension_semantics=("parallel", "parallel"),
            vmem_limit_bytes=_VMEM_LIMIT),
    )(x, w, b.reshape(1, N))


def _dense_add_ln_kernel(x_ref, w_ref, b_ref, res_ref, g_ref, beta_ref,
                         o_ref, *, eps):
    # Full-K matmul, then fused residual-add + LayerNorm epilogue (all f32 math).
    y = jnp.dot(x_ref[...], w_ref[...], preferred_element_type=jnp.float32)
    y = y + b_ref[...].astype(jnp.float32) + res_ref[...].astype(jnp.float32)
    mu = jnp.mean(y, axis=-1, keepdims=True)
    var = jnp.mean((y - mu) ** 2, axis=-1, keepdims=True)
    y = (y - mu) * jax.lax.rsqrt(var + eps)
    y = y * g_ref[...].astype(jnp.float32) + beta_ref[...].astype(jnp.float32)
    o_ref[...] = y.astype(o_ref.dtype)


def dense_add_layernorm(x, w, b, residual, gamma, beta, eps=1e-12, out_dtype=None):
    """out = LayerNorm(x @ w + b + residual); K and N (=hidden) un-tiled."""
    M, K = x.shape
    N = w.shape[1]
    out_dtype = out_dtype or residual.dtype
    tm = _ln_row_tile(M, K, N, _TILE_BUDGET)
    return pl.pallas_call(
        partial(_dense_add_ln_kernel, eps=eps),
        out_shape=jax.ShapeDtypeStruct((M, N), out_dtype),
        grid=(M // tm,),
        in_specs=[
            pl.BlockSpec((tm, K), lambda i: (i, 0)),
            pl.BlockSpec((K, N), lambda i: (0, 0)),
            pl.BlockSpec((1, N), lambda i: (0, 0)),
            pl.BlockSpec((tm, N), lambda i: (i, 0)),
            pl.BlockSpec((1, N), lambda i: (0, 0)),
            pl.BlockSpec((1, N), lambda i: (0, 0)),
        ],
        out_specs=pl.BlockSpec((tm, N), lambda i: (i, 0)),
        compiler_params=pltpu.CompilerParams(
            dimension_semantics=("parallel",),
            vmem_limit_bytes=_VMEM_LIMIT),
    )(x, w, b.reshape(1, N), residual, gamma.reshape(1, N), beta.reshape(1, N))


def _layernorm_kernel(x_ref, g_ref, b_ref, o_ref, *, eps):
    x = x_ref[...].astype(jnp.float32)
    mu = jnp.mean(x, axis=-1, keepdims=True)
    var = jnp.mean((x - mu) ** 2, axis=-1, keepdims=True)
    y = (x - mu) * jax.lax.rsqrt(var + eps)
    o_ref[...] = (y * g_ref[...] + b_ref[...]).astype(o_ref.dtype)


def layernorm(x, gamma, beta, eps=1e-12, out_dtype=None):
    M, H = x.shape
    out_dtype = out_dtype or x.dtype
    tm = _largest_divisor_tile(M, 512, 16)
    return pl.pallas_call(
        partial(_layernorm_kernel, eps=eps),
        out_shape=jax.ShapeDtypeStruct((M, H), out_dtype),
        grid=(M // tm,),
        in_specs=[
            pl.BlockSpec((tm, H), lambda i: (i, 0)),
            pl.BlockSpec((1, H), lambda i: (0, 0)),
            pl.BlockSpec((1, H), lambda i: (0, 0)),
        ],
        out_specs=pl.BlockSpec((tm, H), lambda i: (i, 0)),
        compiler_params=pltpu.CompilerParams(
            dimension_semantics=("parallel",),
            vmem_limit_bytes=_VMEM_LIMIT),
    )(x, gamma.reshape(1, H), beta.reshape(1, H))


def _attention_kernel(qkv_ref, bias_ref, o_ref, *, nh, dh, tq):
    """One (batch, query-tile) step: all heads, keys un-tiled (plain softmax).

    The 1/sqrt(dh) scale is already folded into the Q projection weights, so the
    kernel does no scaling. Each head's f32 context is stored directly into its
    lane slice of the lane-dense (tq, H) output block (no concat, minimal live set).
    """
    H = nh * dh
    qt = pl.program_id(1)
    row = pl.multiple_of(qt * tq, tq)
    bias = bias_ref[0]                                           # (1, S) f32
    for h in range(nh):
        c0 = h * dh
        qh = qkv_ref[0, pl.ds(row, tq), c0:c0 + dh]              # (tq, dh) bf16
        kh = qkv_ref[0, :, H + c0:H + c0 + dh]                   # (S,  dh)
        vh = qkv_ref[0, :, 2 * H + c0:2 * H + c0 + dh]           # (S,  dh)
        s = jax.lax.dot_general(qh, kh, (((1,), (1,)), ((), ())),
                                preferred_element_type=jnp.float32)  # (tq, S)
        s = s + bias
        s = s - jnp.max(s, axis=-1, keepdims=True)
        p = jnp.exp(s)
        p = p * pl.reciprocal(jnp.sum(p, axis=-1, keepdims=True), approx=True)
        ctx = jnp.dot(p.astype(vh.dtype), vh,
                      preferred_element_type=jnp.float32)            # (tq, dh)
        o_ref[0, :, c0:c0 + dh] = ctx.astype(o_ref.dtype)


def attention(qkv, attn_bias, *, nh, dh):
    B, S, threeH = qkv.shape
    H = nh * dh
    # Query tiling: full S up to 512 (scores block <= ~1 MiB f32 per head);
    # tile longer sequences so the (tq, S) scores stay VMEM-friendly on v7x.
    tq = S if S <= 512 else _largest_divisor_tile(S, 256, 8)
    n_q = S // tq
    return pl.pallas_call(
        partial(_attention_kernel, nh=nh, dh=dh, tq=tq),
        out_shape=jax.ShapeDtypeStruct((B, S, H), qkv.dtype),
        grid=(B, n_q),
        in_specs=[
            pl.BlockSpec((1, S, threeH), lambda b, q: (b, 0, 0)),
            pl.BlockSpec((1, 1, S), lambda b, q: (b, 0, 0)),
        ],
        out_specs=pl.BlockSpec((1, tq, H), lambda b, q: (b, q, 0)),
        compiler_params=pltpu.CompilerParams(
            dimension_semantics=("parallel", "parallel"),
            vmem_limit_bytes=_VMEM_LIMIT),
    )(qkv, attn_bias)


def _pooler_cls_kernel(cls_ref, pw_ref, pb_ref, cw_ref, cb_ref, o_ref):
    pooled = jnp.dot(cls_ref[...], pw_ref[...],
                     preferred_element_type=jnp.float32) + pb_ref[...]
    pooled = jnp.tanh(pooled)
    logits = jnp.dot(pooled.astype(cw_ref.dtype), cw_ref[...],
                     preferred_element_type=jnp.float32) + cb_ref[...]
    o_ref[...] = logits.astype(o_ref.dtype)


def pooler_classifier(cls, pool_w, pool_b, cls_w, cls_b):
    B, H = cls.shape
    C = cls_w.shape[1]
    vmem = pl.BlockSpec(memory_space=pltpu.MemorySpace.VMEM)
    return pl.pallas_call(
        _pooler_cls_kernel,
        out_shape=jax.ShapeDtypeStruct((B, C), jnp.float32),
        in_specs=[vmem] * 5,
        out_specs=vmem,
    )(cls, pool_w, pool_b.reshape(1, H), cls_w, cls_b.reshape(1, C))


# --------------------------- Parameter init ---------------------------------

def init_bert_params(key, cfg):
    std = 0.02
    H, I = cfg["hidden"], cfg["intermediate"]
    dh = H // cfg["heads"]
    attn_scale = 1.0 / math.sqrt(dh)
    wdt = jnp.bfloat16  # MXU-side weight storage

    def normal(k, shape, dtype=wdt):
        return (std * jax.random.normal(k, shape, jnp.float32)).astype(dtype)

    def qkv_weight(k):
        # Fold the 1/sqrt(dh) attention scale into the Q columns at weight-prep
        # time (b_qkv is zero so its fold is a no-op); the attention kernel then
        # does no per-token scaling.
        w = std * jax.random.normal(k, (H, 3 * H), jnp.float32)
        w = w.at[:, :H].multiply(attn_scale)
        return w.astype(wdt)

    keys = iter(jax.random.split(key, 8 + 8 * cfg["layers"]))
    params = {
        "word_emb": normal(next(keys), (cfg["vocab"], H), jnp.float32),
        "pos_emb": normal(next(keys), (cfg["max_pos"], H), jnp.float32),
        "type_emb": normal(next(keys), (cfg["type_vocab"], H), jnp.float32),
        "emb_ln_g": jnp.ones((H,), jnp.float32),
        "emb_ln_b": jnp.zeros((H,), jnp.float32),
        "layers": [],
        "pool_w": normal(next(keys), (H, H)),
        "pool_b": jnp.zeros((H,), jnp.float32),
        "cls_w": normal(next(keys), (H, cfg["num_classes"])),
        "cls_b": jnp.zeros((cfg["num_classes"],), jnp.float32),
    }
    for _ in range(cfg["layers"]):
        params["layers"].append({
            "w_qkv": qkv_weight(next(keys)),            # fused QKV, Q pre-scaled
            "b_qkv": jnp.zeros((3 * H,), jnp.float32),
            "wo": normal(next(keys), (H, H)),
            "bo": jnp.zeros((H,), jnp.float32),
            "ln1_g": jnp.ones((H,), jnp.float32),
            "ln1_b": jnp.zeros((H,), jnp.float32),
            "wi": normal(next(keys), (H, I)),
            "bi": jnp.zeros((I,), jnp.float32),
            "wo2": normal(next(keys), (I, H)),
            "bo2": jnp.zeros((H,), jnp.float32),
            "ln2_g": jnp.ones((H,), jnp.float32),
            "ln2_b": jnp.zeros((H,), jnp.float32),
        })
    return params


# --------------------------- Forward pass ------------------------------------

def bert_forward(params, input_ids, attention_mask, cfg):
    B, S = input_ids.shape
    H = cfg["hidden"]
    nh = cfg["heads"]
    dh = H // nh

    # Embeddings (gather = plain-JAX glue, f32) + embedding LayerNorm kernel.
    # TODO(synk): token_type_ids assumed all-zero (HF default when not provided).
    pos_ids = jnp.arange(S)
    emb = (params["word_emb"][input_ids]
           + params["pos_emb"][pos_ids][None, :, :]
           + params["type_emb"][0][None, None, :])
    x = layernorm(emb.reshape(B * S, H), params["emb_ln_g"], params["emb_ln_b"],
                  out_dtype=jnp.bfloat16)

    # Extended attention mask: (1 - mask) * large negative, (B, 1, S) f32.
    attn_bias = ((1.0 - attention_mask.astype(jnp.float32)) * -1e9).reshape(B, 1, S)

    for layer in params["layers"]:
        # Fused QKV projection -> (B*S, 3H); head split happens in-kernel.
        qkv = dense(x, layer["w_qkv"], layer["b_qkv"])
        ctx = attention(qkv.reshape(B, S, 3 * H), attn_bias, nh=nh, dh=dh)   # (B,S,H)
        # Attention output projection fused with residual-add + LayerNorm.
        x = dense_add_layernorm(ctx.reshape(B * S, H), layer["wo"], layer["bo"],
                                x, layer["ln1_g"], layer["ln1_b"])
        # FFN: up-projection + GELU, then down-projection fused with add+LN.
        ff = dense(x, layer["wi"], layer["bi"], activation="gelu")
        x = dense_add_layernorm(ff, layer["wo2"], layer["bo2"],
                                x, layer["ln2_g"], layer["ln2_b"])

    # Pooler (CLS -> dense -> tanh) + classifier head, fused into one tiny kernel.
    cls = x.reshape(B, S, H)[:, 0, :]
    logits = pooler_classifier(cls, params["pool_w"], params["pool_b"],
                               params["cls_w"], params["cls_b"])
    return logits


# --------------------------- Main --------------------------------------------

if __name__ == "__main__":
    cfg = dict(vocab=100, max_pos=16, type_vocab=2, hidden=32, heads=4,
               intermediate=64, layers=2, num_classes=2)
    B, S = 2, 8

    key = jax.random.PRNGKey(0)
    pkey, ikey = jax.random.split(key)
    params = init_bert_params(pkey, cfg)

    input_ids = jax.random.randint(ikey, (B, S), 0, cfg["vocab"], dtype=jnp.int32)
    attention_mask = jnp.ones((B, S), dtype=jnp.int32).at[1, 6:].set(0)

    fwd = jax.jit(partial(bert_forward, cfg=cfg))
    logits = fwd(params, input_ids, attention_mask)
    jax.block_until_ready(logits)

    assert logits.shape == (B, cfg["num_classes"])
    assert logits.dtype == jnp.float32
    print("KERNEL_OK")
</pallas_src>

<mosaic_0001>
module attributes {stable_mosaic.version = 11 : i64} {
  func.func @_dense_kernel(%arg0: i32, %arg1: i32, %arg2: memref<16x32xbf16, #tpu.memory_space<vmem>>, %arg3: memref<32x96xbf16, #tpu.memory_space<vmem>>, %arg4: memref<1x96xf32, #tpu.memory_space<vmem>>, %arg5: memref<16x96xbf16, #tpu.memory_space<vmem>>) attributes {dimension_semantics = [#tpu.dimension_semantics<parallel>, #tpu.dimension_semantics<parallel>], iteration_bounds = array<i64: 1, 1>, scalar_prefetch = 0 : i64, scratch_operands = 0 : i64, tpu.core_type = #tpu.core_type<tc>, window_params = [{transform_indices = @transform_0, window_bounds = array<i64: 16, 32>}, {transform_indices = @transform_1, window_bounds = array<i64: 32, 96>}, {transform_indices = @transform_2, window_bounds = array<i64: 1, 96>}, {transform_indices = @transform_3, window_bounds = array<i64: 16, 96>}]} {
    %c0 = arith.constant 0 : index
    %c0_0 = arith.constant 0 : index
    %0 = vector.load %arg2[%c0, %c0_0] : memref<16x32xbf16, #tpu.memory_space<vmem>>, vector<16x32xbf16>
    %c0_1 = arith.constant 0 : index
    %c0_2 = arith.constant 0 : index
    %1 = vector.load %arg3[%c0_1, %c0_2] : memref<32x96xbf16, #tpu.memory_space<vmem>>, vector<32x96xbf16>
    %cst = arith.constant dense<0.000000e+00> : vector<16x96xf32>
    %2 = tpu.matmul %0, %1, %cst {dimension_numbers = #tpu.dot_dimension_numbers<[1], [0], [0], [1], [0, 0, 1, 1], [], []>} : vector<16x32xbf16>, vector<32x96xbf16>, vector<16x96xf32> -> vector<16x96xf32>
    %c0_3 = arith.constant 0 : index
    %c0_4 = arith.constant 0 : index
    %3 = vector.load %arg4[%c0_3, %c0_4] : memref<1x96xf32, #tpu.memory_space<vmem>>, vector<1x96xf32>
    %4 = vector.broadcast %3 : vector<1x96xf32> to vector<16x96xf32>
    %5 = arith.addf %2, %4 : vector<16x96xf32>
    %6 = arith.truncf %5 : vector<16x96xf32> to vector<16x96xbf16>
    %c0_5 = arith.constant 0 : index
    %c0_6 = arith.constant 0 : index
    %7 = vector.load %arg5[%c0_5, %c0_6] : memref<16x96xbf16, #tpu.memory_space<vmem>>, vector<16x96xbf16>
    tpu.vector_store %arg5[%c0_5, %c0_6], %6 {strides = array<i32>} : memref<16x96xbf16, #tpu.memory_space<vmem>>, vector<16x96xbf16>,
    return
  }
  func.func @transform_0(%arg0: i32, %arg1: i32) -> (i32, i32) {
    %c0_i32 = arith.constant 0 : i32
    %c0_i32_0 = arith.constant 0 : i32
    return %arg0, %c0_i32 : i32, i32
  }
  func.func @transform_1(%arg0: i32, %arg1: i32) -> (i32, i32) {
    %c0_i32 = arith.constant 0 : i32
    %c0_i32_0 = arith.constant 0 : i32
    return %c0_i32, %arg1 : i32, i32
  }
  func.func @transform_2(%arg0: i32, %arg1: i32) -> (i32, i32) {
    %c0_i32 = arith.constant 0 : i32
    %c0_i32_0 = arith.constant 0 : i32
    return %c0_i32, %arg1 : i32, i32
  }
  func.func @transform_3(%arg0: i32, %arg1: i32) -> (i32, i32) {
    %c0_i32 = arith.constant 0 : i32
    return %arg0, %arg1 : i32, i32
  }
}

module attributes {stable_mosaic.version = 11 : i64} {
  func.func @_layernorm_kernel(%arg0: i32, %arg1: memref<16x32xf32, #tpu.memory_space<vmem>>, %arg2: memref<1x32xf32, #tpu.memory_space<vmem>>, %arg3: memref<1x32xf32, #tpu.memory_space<vmem>>, %arg4: memref<16x32xbf16, #tpu.memory_space<vmem>>) attributes {dimension_semantics = [#tpu.dimension_semantics<parallel>], iteration_bounds = array<i64: 1>, scalar_prefetch = 0 : i64, scratch_operands = 0 : i64, tpu.core_type = #tpu.core_type<tc>, window_params = [{transform_indices = @transform_0, window_bounds = array<i64: 16, 32>}, {pipeline_mode = #tpu.pipeline_mode<synchronous>, transform_indices = @transform_1, window_bounds = array<i64: 1, 32>}, {pipeline_mode = #tpu.pipeline_mode<synchronous>, transform_indices = @transform_2, window_bounds = array<i64: 1, 32>}, {transform_indices = @transform_3, window_bounds = array<i64: 16, 32>}]} {
    %c0 = arith.constant 0 : index
    %c0_0 = arith.constant 0 : index
    %0 = vector.load %arg1[%c0, %c0_0] : memref<16x32xf32, #tpu.memory_space<vmem>>, vector<16x32xf32>
    %cst = arith.constant dense<0.000000e+00> : vector<16xf32>
    %1 = vector.multi_reduction <add>, %0, %cst [1] : vector<16x32xf32> to vector<16xf32>
    %2 = vector.shape_cast %1 : vector<16xf32> to vector<16x1xf32>
    %cst_1 = arith.constant 3.200000e+01 : f32
    %3 = vector.broadcast %cst_1 : f32 to vector<16x1xf32>
    %4 = arith.divf %2, %3 : vector<16x1xf32>
    %5 = vector.broadcast %4 : vector<16x1xf32> to vector<16x32xf32>
    %6 = arith.subf %0, %5 : vector<16x32xf32>
    %7 = arith.mulf %6, %6 : vector<16x32xf32>
    %cst_2 = arith.constant dense<0.000000e+00> : vector<16xf32>
    %8 = vector.multi_reduction <add>, %7, %cst_2 [1] : vector<16x32xf32> to vector<16xf32>
    %9 = vector.shape_cast %8 : vector<16xf32> to vector<16x1xf32>
    %cst_3 = arith.constant 3.200000e+01 : f32
    %10 = vector.broadcast %cst_3 : f32 to vector<16x1xf32>
    %11 = arith.divf %9, %10 : vector<16x1xf32>
    %12 = vector.broadcast %4 : vector<16x1xf32> to vector<16x32xf32>
    %13 = arith.subf %0, %12 : vector<16x32xf32>
    %cst_4 = arith.constant 9.99999996E-13 : f32
    %14 = vector.broadcast %cst_4 : f32 to vector<16x1xf32>
    %15 = arith.addf %11, %14 : vector<16x1xf32>
    %16 = math.rsqrt %15 : vector<16x1xf32>
    %17 = vector.broadcast %16 : vector<16x1xf32> to vector<16x32xf32>
    %18 = arith.mulf %13, %17 : vector<16x32xf32>
    %c0_5 = arith.constant 0 : index
    %c0_6 = arith.constant 0 : index
    %19 = vector.load %arg2[%c0_5, %c0_6] : memref<1x32xf32, #tpu.memory_space<vmem>>, vector<1x32xf32>
    %20 = vector.broadcast %19 : vector<1x32xf32> to vector<16x32xf32>
    %21 = arith.mulf %18, %20 : vector<16x32xf32>
    %c0_7 = arith.constant 0 : index
    %c0_8 = arith.constant 0 : index
    %22 = vector.load %arg3[%c0_7, %c0_8] : memref<1x32xf32, #tpu.memory_space<vmem>>, vector<1x32xf32>
    %23 = vector.broadcast %22 : vector<1x32xf32> to vector<16x32xf32>
    %24 = arith.addf %21, %23 : vector<16x32xf32>
    %25 = arith.truncf %24 : vector<16x32xf32> to vector<16x32xbf16>
    %c0_9 = arith.constant 0 : index
    %c0_10 = arith.constant 0 : index
    %26 = vector.load %arg4[%c0_9, %c0_10] : memref<16x32xbf16, #tpu.memory_space<vmem>>, vector<16x32xbf16>
    tpu.vector_store %arg4[%c0_9, %c0_10], %25 {strides = array<i32>} : memref<16x32xbf16, #tpu.memory_space<vmem>>, vector<16x32xbf16>,
    return
  }
  func.func @transform_0(%arg0: i32) -> (i32, i32) {
    %c0_i32 = arith.constant 0 : i32
    %c0_i32_0 = arith.constant 0 : i32
    return %arg0, %c0_i32 : i32, i32
  }
  func.func @transform_1(%arg0: i32) -> (i32, i32) {
    %c0_i32 = arith.constant 0 : i32
    %c0_i32_0 = arith.constant 0 : i32
    %c0_i32_1 = arith.constant 0 : i32
    return %c0_i32, %c0_i32_0 : i32, i32
  }
  func.func @transform_2(%arg0: i32) -> (i32, i32) {
    %c0_i32 = arith.constant 0 : i32
    %c0_i32_0 = arith.constant 0 : i32
    %c0_i32_1 = arith.constant 0 : i32
    return %c0_i32, %c0_i32_0 : i32, i32
  }
  func.func @transform_3(%arg0: i32) -> (i32, i32) {
    %c0_i32 = arith.constant 0 : i32
    %c0_i32_0 = arith.constant 0 : i32
    return %arg0, %c0_i32 : i32, i32
  }
}

module attributes {stable_mosaic.version = 11 : i64} {
  func.func @_attention_kernel(%arg0: i32, %arg1: i32, %arg2: memref<1x8x96xbf16, #tpu.memory_space<vmem>>, %arg3: memref<1x1x8xf32, #tpu.memory_space<vmem>>, %arg4: memref<1x8x32xbf16, #tpu.memory_space<vmem>>) attributes {dimension_semantics = [#tpu.dimension_semantics<parallel>, #tpu.dimension_semantics<parallel>], iteration_bounds = array<i64: 2, 1>, scalar_prefetch = 0 : i64, scratch_operands = 0 : i64, tpu.core_type = #tpu.core_type<tc>, window_params = [{transform_indices = @transform_0, window_bounds = array<i64: 1, 8, 96>}, {transform_indices = @transform_1, window_bounds = array<i64: 1, 1, 8>}, {transform_indices = @transform_2, window_bounds = array<i64: 1, 8, 32>}]} {
    %c8_i32 = arith.constant 8 : i32
    %0 = arith.muli %arg1, %c8_i32 : i32
    %1 = tpu.assume_multiple %0, 8 : i32
    %c0 = arith.constant 0 : index
    %c0_0 = arith.constant 0 : index
    %c0_1 = arith.constant 0 : index
    %2 = vector.load %arg3[%c0, %c0_0, %c0_1] : memref<1x1x8xf32, #tpu.memory_space<vmem>>, vector<1x1x8xf32>
    %3 = vector.shape_cast %2 : vector<1x1x8xf32> to vector<1x8xf32>
    %c0_2 = arith.constant 0 : index
    %4 = arith.index_cast %1 : i32 to index
    %c0_3 = arith.constant 0 : index
    %5 = vector.load %arg2[%c0_2, %4, %c0_3] : memref<1x8x96xbf16, #tpu.memory_space<vmem>>, vector<1x8x8xbf16>
    %6 = vector.shape_cast %5 : vector<1x8x8xbf16> to vector<8x8xbf16>
    %c0_4 = arith.constant 0 : index
    %c0_5 = arith.constant 0 : index
    %c32 = arith.constant 32 : index
    %7 = vector.load %arg2[%c0_4, %c0_5, %c32] : memref<1x8x96xbf16, #tpu.memory_space<vmem>>, vector<1x8x8xbf16>
    %8 = vector.shape_cast %7 : vector<1x8x8xbf16> to vector<8x8xbf16>
    %c0_6 = arith.constant 0 : index
    %c0_7 = arith.constant 0 : index
    %c64 = arith.constant 64 : index
    %9 = vector.load %arg2[%c0_6, %c0_7, %c64] : memref<1x8x96xbf16, #tpu.memory_space<vmem>>, vector<1x8x8xbf16>
    %10 = vector.shape_cast %9 : vector<1x8x8xbf16> to vector<8x8xbf16>
    %cst = arith.constant dense<0.000000e+00> : vector<8x8xf32>
    %11 = tpu.matmul %6, %8, %cst {dimension_numbers = #tpu.dot_dimension_numbers<[1], [1], [0], [0], [0, 0, 1, 0], [], []>} : vector<8x8xbf16>, vector<8x8xbf16>, vector<8x8xf32> -> vector<8x8xf32>
    %12 = vector.broadcast %3 : vector<1x8xf32> to vector<8x8xf32>
    %13 = arith.addf %11, %12 : vector<8x8xf32>
    %cst_8 = arith.constant dense<0xFF800000> : vector<8xf32>
    %14 = vector.multi_reduction <maximumf>, %13, %cst_8 [1] : vector<8x8xf32> to vector<8xf32>
    %15 = vector.shape_cast %14 : vector<8xf32> to vector<8x1xf32>
    %16 = vector.broadcast %15 : vector<8x1xf32> to vector<8x8xf32>
    %17 = arith.subf %13, %16 : vector<8x8xf32>
    %18 = math.exp %17 : vector<8x8xf32>
    %cst_9 = arith.constant dense<0.000000e+00> : vector<8xf32>
    %19 = vector.multi_reduction <add>, %18, %cst_9 [1] : vector<8x8xf32> to vector<8xf32>
    %20 = vector.shape_cast %19 : vector<8xf32> to vector<8x1xf32>
    %21 = tpu.reciprocal %20 {approx = true} : vector<8x1xf32> -> vector<8x1xf32>
    %22 = vector.broadcast %21 : vector<8x1xf32> to vector<8x8xf32>
    %23 = arith.mulf %18, %22 : vector<8x8xf32>
    %24 = arith.truncf %23 : vector<8x8xf32> to vector<8x8xbf16>
    %cst_10 = arith.constant dense<0.000000e+00> : vector<8x8xf32>
    %25 = tpu.matmul %24, %10, %cst_10 {dimension_numbers = #tpu.dot_dimension_numbers<[1], [0], [0], [1], [0, 0, 1, 1], [], []>} : vector<8x8xbf16>, vector<8x8xbf16>, vector<8x8xf32> -> vector<8x8xf32>
    %26 = arith.truncf %25 : vector<8x8xf32> to vector<8x8xbf16>
    %c0_11 = arith.constant 0 : index
    %c0_12 = arith.constant 0 : index
    %c0_13 = arith.constant 0 : index
    %27 = vector.load %arg4[%c0_11, %c0_12, %c0_13] : memref<1x8x32xbf16, #tpu.memory_space<vmem>>, vector<1x8x8xbf16>
    %28 = vector.shape_cast %27 : vector<1x8x8xbf16> to vector<8x8xbf16>
    %29 = vector.shape_cast %26 : vector<8x8xbf16> to vector<1x8x8xbf16>
    tpu.vector_store %arg4[%c0_11, %c0_12, %c0_13], %29 {strides = array<i32>} : memref<1x8x32xbf16, #tpu.memory_space<vmem>>, vector<1x8x8xbf16>,
    %c0_14 = arith.constant 0 : index
    %30 = arith.index_cast %1 : i32 to index
    %c8 = arith.constant 8 : index
    %31 = vector.load %arg2[%c0_14, %30, %c8] : memref<1x8x96xbf16, #tpu.memory_space<vmem>>, vector<1x8x8xbf16>
    %32 = vector.shape_cast %31 : vector<1x8x8xbf16> to vector<8x8xbf16>
    %c0_15 = arith.constant 0 : index
    %c0_16 = arith.constant 0 : index
    %c40 = arith.constant 40 : index
    %33 = vector.load %arg2[%c0_15, %c0_16, %c40] : memref<1x8x96xbf16, #tpu.memory_space<vmem>>, vector<1x8x8xbf16>
    %34 = vector.shape_cast %33 : vector<1x8x8xbf16> to vector<8x8xbf16>
    %c0_17 = arith.constant 0 : index
    %c0_18 = arith.constant 0 : index
    %c72 = arith.constant 72 : index
    %35 = vector.load %arg2[%c0_17, %c0_18, %c72] : memref<1x8x96xbf16, #tpu.memory_space<vmem>>, vector<1x8x8xbf16>
    %36 = vector.shape_cast %35 : vector<1x8x8xbf16> to vector<8x8xbf16>
    %cst_19 = arith.constant dense<0.000000e+00> : vector<8x8xf32>
    %37 = tpu.matmul %32, %34, %cst_19 {dimension_numbers = #tpu.dot_dimension_numbers<[1], [1], [0], [0], [0, 0, 1, 0], [], []>} : vector<8x8xbf16>, vector<8x8xbf16>, vector<8x8xf32> -> vector<8x8xf32>
    %38 = vector.broadcast %3 : vector<1x8xf32> to vector<8x8xf32>
    %39 = arith.addf %37, %38 : vector<8x8xf32>
    %cst_20 = arith.constant dense<0xFF800000> : vector<8xf32>
    %40 = vector.multi_reduction <maximumf>, %39, %cst_20 [1] : vector<8x8xf32> to vector<8xf32>
    %41 = vector.shape_cast %40 : vector<8xf32> to vector<8x1xf32>
    %42 = vector.broadcast %41 : vector<8x1xf32> to vector<8x8xf32>
    %43 = arith.subf %39, %42 : vector<8x8xf32>
    %44 = math.exp %43 : vector<8x8xf32>
    %cst_21 = arith.constant dense<0.000000e+00> : vector<8xf32>
    %45 = vector.multi_reduction <add>, %44, %cst_21 [1] : vector<8x8xf32> to vector<8xf32>
    %46 = vector.shape_cast %45 : vector<8xf32> to vector<8x1xf32>
    %47 = tpu.reciprocal %46 {approx = true} : vector<8x1xf32> -> vector<8x1xf32>
    %48 = vector.broadcast %47 : vector<8x1xf32> to vector<8x8xf32>
    %49 = arith.mulf %44, %48 : vector<8x8xf32>
    %50 = arith.truncf %49 : vector<8x8xf32> to vector<8x8xbf16>
    %cst_22 = arith.constant dense<0.000000e+00> : vector<8x8xf32>
    %51 = tpu.matmul %50, %36, %cst_22 {dimension_numbers = #tpu.dot_dimension_numbers<[1], [0], [0], [1], [0, 0, 1, 1], [], []>} : vector<8x8xbf16>, vector<8x8xbf16>, vector<8x8xf32> -> vector<8x8xf32>
    %52 = arith.truncf %51 : vector<8x8xf32> to vector<8x8xbf16>
    %c0_23 = arith.constant 0 : index
    %c0_24 = arith.constant 0 : index
    %c8_25 = arith.constant 8 : index
    %53 = vector.load %arg4[%c0_23, %c0_24, %c8_25] : memref<1x8x32xbf16, #tpu.memory_space<vmem>>, vector<1x8x8xbf16>
    %54 = vector.shape_cast %53 : vector<1x8x8xbf16> to vector<8x8xbf16>
    %55 = vector.shape_cast %52 : vector<8x8xbf16> to vector<1x8x8xbf16>
    tpu.vector_store %arg4[%c0_23, %c0_24, %c8_25], %55 {strides = array<i32>} : memref<1x8x32xbf16, #tpu.memory_space<vmem>>, vector<1x8x8xbf16>,
    %c0_26 = arith.constant 0 : index
    %56 = arith.index_cast %1 : i32 to index
    %c16 = arith.constant 16 : index
    %57 = vector.load %arg2[%c0_26, %56, %c16] : memref<1x8x96xbf16, #tpu.memory_space<vmem>>, vector<1x8x8xbf16>
    %58 = vector.shape_cast %57 : vector<1x8x8xbf16> to vector<8x8xbf16>
    %c0_27 = arith.constant 0 : index
    %c0_28 = arith.constant 0 : index
    %c48 = arith.constant 48 : index
    %59 = vector.load %arg2[%c0_27, %c0_28, %c48] : memref<1x8x96xbf16, #tpu.memory_space<vmem>>, vector<1x8x8xbf16>
    %60 = vector.shape_cast %59 : vector<1x8x8xbf16> to vector<8x8xbf16>
    %c0_29 = arith.constant 0 : index
    %c0_30 = arith.constant 0 : index
    %c80 = arith.constant 80 : index
    %61 = vector.load %arg2[%c0_29, %c0_30, %c80] : memref<1x8x96xbf16, #tpu.memory_space<vmem>>, vector<1x8x8xbf16>
    %62 = vector.shape_cast %61 : vector<1x8x8xbf16> to vector<8x8xbf16>
    %cst_31 = arith.constant dense<0.000000e+00> : vector<8x8xf32>
    %63 = tpu.matmul %58, %60, %cst_31 {dimension_numbers = #tpu.dot_dimension_numbers<[1], [1], [0], [0], [0, 0, 1, 0], [], []>} : vector<8x8xbf16>, vector<8x8xbf16>, vector<8x8xf32> -> vector<8x8xf32>
    %64 = vector.broadcast %3 : vector<1x8xf32> to vector<8x8xf32>
    %65 = arith.addf %63, %64 : vector<8x8xf32>
    %cst_32 = arith.constant dense<0xFF800000> : vector<8xf32>
    %66 = vector.multi_reduction <maximumf>, %65, %cst_32 [1] : vector<8x8xf32> to vector<8xf32>
    %67 = vector.shape_cast %66 : vector<8xf32> to vector<8x1xf32>
    %68 = vector.broadcast %67 : vector<8x1xf32> to vector<8x8xf32>
    %69 = arith.subf %65, %68 : vector<8x8xf32>
    %70 = math.exp %69 : vector<8x8xf32>
    %cst_33 = arith.constant dense<0.000000e+00> : vector<8xf32>
    %71 = vector.multi_reduction <add>, %70, %cst_33 [1] : vector<8x8xf32> to vector<8xf32>
    %72 = vector.shape_cast %71 : vector<8xf32> to vector<8x1xf32>
    %73 = tpu.reciprocal %72 {approx = true} : vector<8x1xf32> -> vector<8x1xf32>
    %74 = vector.broadcast %73 : vector<8x1xf32> to vector<8x8xf32>
    %75 = arith.mulf %70, %74 : vector<8x8xf32>
    %76 = arith.truncf %75 : vector<8x8xf32> to vector<8x8xbf16>
    %cst_34 = arith.constant dense<0.000000e+00> : vector<8x8xf32>
    %77 = tpu.matmul %76, %62, %cst_34 {dimension_numbers = #tpu.dot_dimension_numbers<[1], [0], [0], [1], [0, 0, 1, 1], [], []>} : vector<8x8xbf16>, vector<8x8xbf16>, vector<8x8xf32> -> vector<8x8xf32>
    %78 = arith.truncf %77 : vector<8x8xf32> to vector<8x8xbf16>
    %c0_35 = arith.constant 0 : index
    %c0_36 = arith.constant 0 : index
    %c16_37 = arith.constant 16 : index
    %79 = vector.load %arg4[%c0_35, %c0_36, %c16_37] : memref<1x8x32xbf16, #tpu.memory_space<vmem>>, vector<1x8x8xbf16>
    %80 = vector.shape_cast %79 : vector<1x8x8xbf16> to vector<8x8xbf16>
    %81 = vector.shape_cast %78 : vector<8x8xbf16> to vector<1x8x8xbf16>
    tpu.vector_store %arg4[%c0_35, %c0_36, %c16_37], %81 {strides = array<i32>} : memref<1x8x32xbf16, #tpu.memory_space<vmem>>, vector<1x8x8xbf16>,
    %c0_38 = arith.constant 0 : index
    %82 = arith.index_cast %1 : i32 to index
    %c24 = arith.constant 24 : index
    %83 = vector.load %arg2[%c0_38, %82, %c24] : memref<1x8x96xbf16, #tpu.memory_space<vmem>>, vector<1x8x8xbf16>
    %84 = vector.shape_cast %83 : vector<1x8x8xbf16> to vector<8x8xbf16>
    %c0_39 = arith.constant 0 : index
    %c0_40 = arith.constant 0 : index
    %c56 = arith.constant 56 : index
    %85 = vector.load %arg2[%c0_39, %c0_40, %c56] : memref<1x8x96xbf16, #tpu.memory_space<vmem>>, vector<1x8x8xbf16>
    %86 = vector.shape_cast %85 : vector<1x8x8xbf16> to vector<8x8xbf16>
    %c0_41 = arith.constant 0 : index
    %c0_42 = arith.constant 0 : index
    %c88 = arith.constant 88 : index
    %87 = vector.load %arg2[%c0_41, %c0_42, %c88] : memref<1x8x96xbf16, #tpu.memory_space<vmem>>, vector<1x8x8xbf16>
    %88 = vector.shape_cast %87 : vector<1x8x8xbf16> to vector<8x8xbf16>
    %cst_43 = arith.constant dense<0.000000e+00> : vector<8x8xf32>
    %89 = tpu.matmul %84, %86, %cst_43 {dimension_numbers = #tpu.dot_dimension_numbers<[1], [1], [0], [0], [0, 0, 1, 0], [], []>} : vector<8x8xbf16>, vector<8x8xbf16>, vector<8x8xf32> -> vector<8x8xf32>
    %90 = vector.broadcast %3 : vector<1x8xf32> to vector<8x8xf32>
    %91 = arith.addf %89, %90 : vector<8x8xf32>
    %cst_44 = arith.constant dense<0xFF800000> : vector<8xf32>
    %92 = vector.multi_reduction <maximumf>, %91, %cst_44 [1] : vector<8x8xf32> to vector<8xf32>
    %93 = vector.shape_cast %92 : vector<8xf32> to vector<8x1xf32>
    %94 = vector.broadcast %93 : vector<8x1xf32> to vector<8x8xf32>
    %95 = arith.subf %91, %94 : vector<8x8xf32>
    %96 = math.exp %95 : vector<8x8xf32>
    %cst_45 = arith.constant dense<0.000000e+00> : vector<8xf32>
    %97 = vector.multi_reduction <add>, %96, %cst_45 [1] : vector<8x8xf32> to vector<8xf32>
    %98 = vector.shape_cast %97 : vector<8xf32> to vector<8x1xf32>
    %99 = tpu.reciprocal %98 {approx = true} : vector<8x1xf32> -> vector<8x1xf32>
    %100 = vector.broadcast %99 : vector<8x1xf32> to vector<8x8xf32>
    %101 = arith.mulf %96, %100 : vector<8x8xf32>
    %102 = arith.truncf %101 : vector<8x8xf32> to vector<8x8xbf16>
    %cst_46 = arith.constant dense<0.000000e+00> : vector<8x8xf32>
    %103 = tpu.matmul %102, %88, %cst_46 {dimension_numbers = #tpu.dot_dimension_numbers<[1], [0], [0], [1], [0, 0, 1, 1], [], []>} : vector<8x8xbf16>, vector<8x8xbf16>, vector<8x8xf32> -> vector<8x8xf32>
    %104 = arith.truncf %103 : vector<8x8xf32> to vector<8x8xbf16>
    %c0_47 = arith.constant 0 : index
    %c0_48 = arith.constant 0 : index
    %c24_49 = arith.constant 24 : index
    %105 = vector.load %arg4[%c0_47, %c0_48, %c24_49] : memref<1x8x32xbf16, #tpu.memory_space<vmem>>, vector<1x8x8xbf16>
    %106 = vector.shape_cast %105 : vector<1x8x8xbf16> to vector<8x8xbf16>
    %107 = vector.shape_cast %104 : vector<8x8xbf16> to vector<1x8x8xbf16>
    tpu.vector_store %arg4[%c0_47, %c0_48, %c24_49], %107 {strides = array<i32>} : memref<1x8x32xbf16, #tpu.memory_space<vmem>>, vector<1x8x8xbf16>,
    return
  }
  func.func @transform_0(%arg0: i32, %arg1: i32) -> (i32, i32, i32) {
    %c0_i32 = arith.constant 0 : i32
    %c0_i32_0 = arith.constant 0 : i32
    %c0_i32_1 = arith.constant 0 : i32
    return %arg0, %c0_i32, %c0_i32_0 : i32, i32, i32
  }
  func.func @transform_1(%arg0: i32, %arg1: i32) -> (i32, i32, i32) {
    %c0_i32 = arith.constant 0 : i32
    %c0_i32_0 = arith.constant 0 : i32
    %c0_i32_1 = arith.constant 0 : i32
    return %arg0, %c0_i32, %c0_i32_0 : i32, i32, i32
  }
  func.func @transform_2(%arg0: i32, %arg1: i32) -> (i32, i32, i32) {
    %c0_i32 = arith.constant 0 : i32
    %c0_i32_0 = arith.constant 0 : i32
    return %arg0, %arg1, %c0_i32 : i32, i32, i32
  }
}

module attributes {stable_mosaic.version = 11 : i64} {
  func.func @_dense_add_ln_kernel(%arg0: i32, %arg1: memref<16x32xbf16, #tpu.memory_space<vmem>>, %arg2: memref<32x32xbf16, #tpu.memory_space<vmem>>, %arg3: memref<1x32xf32, #tpu.memory_space<vmem>>, %arg4: memref<16x32xbf16, #tpu.memory_space<vmem>>, %arg5: memref<1x32xf32, #tpu.memory_space<vmem>>, %arg6: memref<1x32xf32, #tpu.memory_space<vmem>>, %arg7: memref<16x32xbf16, #tpu.memory_space<vmem>>) attributes {dimension_semantics = [#tpu.dimension_semantics<parallel>], iteration_bounds = array<i64: 1>, scalar_prefetch = 0 : i64, scratch_operands = 0 : i64, tpu.core_type = #tpu.core_type<tc>, window_params = [{transform_indices = @transform_0, window_bounds = array<i64: 16, 32>}, {pipeline_mode = #tpu.pipeline_mode<synchronous>, transform_indices = @transform_1, window_bounds = array<i64: 32, 32>}, {pipeline_mode = #tpu.pipeline_mode<synchronous>, transform_indices = @transform_2, window_bounds = array<i64: 1, 32>}, {transform_indices = @transform_3, window_bounds = array<i64: 16, 32>}, {pipeline_mode = #tpu.pipeline_mode<synchronous>, transform_indices = @transform_4, window_bounds = array<i64: 1, 32>}, {pipeline_mode = #tpu.pipeline_mode<synchronous>, transform_indices = @transform_5, window_bounds = array<i64: 1, 32>}, {transform_indices = @transform_6, window_bounds = array<i64: 16, 32>}]} {
    %c0 = arith.constant 0 : index
    %c0_0 = arith.constant 0 : index
    %0 = vector.load %arg1[%c0, %c0_0] : memref<16x32xbf16, #tpu.memory_space<vmem>>, vector<16x32xbf16>
    %c0_1 = arith.constant 0 : index
    %c0_2 = arith.constant 0 : index
    %1 = vector.load %arg2[%c0_1, %c0_2] : memref<32x32xbf16, #tpu.memory_space<vmem>>, vector<32x32xbf16>
    %cst = arith.constant dense<0.000000e+00> : vector<16x32xf32>
    %2 = tpu.matmul %0, %1, %cst {dimension_numbers = #tpu.dot_dimension_numbers<[1], [0], [0], [1], [0, 0, 1, 1], [], []>} : vector<16x32xbf16>, vector<32x32xbf16>, vector<16x32xf32> -> vector<16x32xf32>
    %c0_3 = arith.constant 0 : index
    %c0_4 = arith.constant 0 : index
    %3 = vector.load %arg3[%c0_3, %c0_4] : memref<1x32xf32, #tpu.memory_space<vmem>>, vector<1x32xf32>
    %4 = vector.broadcast %3 : vector<1x32xf32> to vector<16x32xf32>
    %5 = arith.addf %2, %4 : vector<16x32xf32>
    %c0_5 = arith.constant 0 : index
    %c0_6 = arith.constant 0 : index
    %6 = vector.load %arg4[%c0_5, %c0_6] : memref<16x32xbf16, #tpu.memory_space<vmem>>, vector<16x32xbf16>
    %7 = arith.extf %6 : vector<16x32xbf16> to vector<16x32xf32>
    %8 = arith.addf %5, %7 : vector<16x32xf32>
    %cst_7 = arith.constant dense<0.000000e+00> : vector<16xf32>
    %9 = vector.multi_reduction <add>, %8, %cst_7 [1] : vector<16x32xf32> to vector<16xf32>
    %10 = vector.shape_cast %9 : vector<16xf32> to vector<16x1xf32>
    %cst_8 = arith.constant 3.200000e+01 : f32
    %11 = vector.broadcast %cst_8 : f32 to vector<16x1xf32>
    %12 = arith.divf %10, %11 : vector<16x1xf32>
    %13 = vector.broadcast %12 : vector<16x1xf32> to vector<16x32xf32>
    %14 = arith.subf %8, %13 : vector<16x32xf32>
    %15 = arith.mulf %14, %14 : vector<16x32xf32>
    %cst_9 = arith.constant dense<0.000000e+00> : vector<16xf32>
    %16 = vector.multi_reduction <add>, %15, %cst_9 [1] : vector<16x32xf32> to vector<16xf32>
    %17 = vector.shape_cast %16 : vector<16xf32> to vector<16x1xf32>
    %cst_10 = arith.constant 3.200000e+01 : f32
    %18 = vector.broadcast %cst_10 : f32 to vector<16x1xf32>
    %19 = arith.divf %17, %18 : vector<16x1xf32>
    %20 = vector.broadcast %12 : vector<16x1xf32> to vector<16x32xf32>
    %21 = arith.subf %8, %20 : vector<16x32xf32>
    %cst_11 = arith.constant 9.99999996E-13 : f32
    %22 = vector.broadcast %cst_11 : f32 to vector<16x1xf32>
    %23 = arith.addf %19, %22 : vector<16x1xf32>
    %24 = math.rsqrt %23 : vector<16x1xf32>
    %25 = vector.broadcast %24 : vector<16x1xf32> to vector<16x32xf32>
    %26 = arith.mulf %21, %25 : vector<16x32xf32>
    %c0_12 = arith.constant 0 : index
    %c0_13 = arith.constant 0 : index
    %27 = vector.load %arg5[%c0_12, %c0_13] : memref<1x32xf32, #tpu.memory_space<vmem>>, vector<1x32xf32>
    %28 = vector.broadcast %27 : vector<1x32xf32> to vector<16x32xf32>
    %29 = arith.mulf %26, %28 : vector<16x32xf32>
    %c0_14 = arith.constant 0 : index
    %c0_15 = arith.constant 0 : index
    %30 = vector.load %arg6[%c0_14, %c0_15] : memref<1x32xf32, #tpu.memory_space<vmem>>, vector<1x32xf32>
    %31 = vector.broadcast %30 : vector<1x32xf32> to vector<16x32xf32>
    %32 = arith.addf %29, %31 : vector<16x32xf32>
    %33 = arith.truncf %32 : vector<16x32xf32> to vector<16x32xbf16>
    %c0_16 = arith.constant 0 : index
    %c0_17 = arith.constant 0 : index
    %34 = vector.load %arg7[%c0_16, %c0_17] : memref<16x32xbf16, #tpu.memory_space<vmem>>, vector<16x32xbf16>
    tpu.vector_store %arg7[%c0_16, %c0_17], %33 {strides = array<i32>} : memref<16x32xbf16, #tpu.memory_space<vmem>>, vector<16x32xbf16>,
    return
  }
  func.func @transform_0(%arg0: i32) -> (i32, i32) {
    %c0_i32 = arith.constant 0 : i32
    %c0_i32_0 = arith.constant 0 : i32
    return %arg0, %c0_i32 : i32, i32
  }
  func.func @transform_1(%arg0: i32) -> (i32, i32) {
    %c0_i32 = arith.constant 0 : i32
    %c0_i32_0 = arith.constant 0 : i32
    %c0_i32_1 = arith.constant 0 : i32
    return %c0_i32, %c0_i32_0 : i32, i32
  }
  func.func @transform_2(%arg0: i32) -> (i32, i32) {
    %c0_i32 = arith.constant 0 : i32
    %c0_i32_0 = arith.constant 0 : i32
    %c0_i32_1 = arith.constant 0 : i32
    return %c0_i32, %c0_i32_0 : i32, i32
  }
  func.func @transform_3(%arg0: i32) -> (i32, i32) {
    %c0_i32 = arith.constant 0 : i32
    %c0_i32_0 = arith.constant 0 : i32
    return %arg0, %c0_i32 : i32, i32
  }
  func.func @transform_4(%arg0: i32) -> (i32, i32) {
    %c0_i32 = arith.constant 0 : i32
    %c0_i32_0 = arith.constant 0 : i32
    %c0_i32_1 = arith.constant 0 : i32
    return %c0_i32, %c0_i32_0 : i32, i32
  }
  func.func @transform_5(%arg0: i32) -> (i32, i32) {
    %c0_i32 = arith.constant 0 : i32
    %c0_i32_0 = arith.constant 0 : i32
    %c0_i32_1 = arith.constant 0 : i32
    return %c0_i32, %c0_i32_0 : i32, i32
  }
  func.func @transform_6(%arg0: i32) -> (i32, i32) {
    %c0_i32 = arith.constant 0 : i32
    %c0_i32_0 = arith.constant 0 : i32
    return %arg0, %c0_i32 : i32, i32
  }
}

module attributes {stable_mosaic.version = 11 : i64} {
  func.func @_dense_kernel(%arg0: i32, %arg1: i32, %arg2: memref<16x32xbf16, #tpu.memory_space<vmem>>, %arg3: memref<32x64xbf16, #tpu.memory_space<vmem>>, %arg4: memref<1x64xf32, #tpu.memory_space<vmem>>, %arg5: memref<16x64xbf16, #tpu.memory_space<vmem>>) attributes {dimension_semantics = [#tpu.dimension_semantics<parallel>, #tpu.dimension_semantics<parallel>], iteration_bounds = array<i64: 1, 1>, scalar_prefetch = 0 : i64, scratch_operands = 0 : i64, tpu.core_type = #tpu.core_type<tc>, window_params = [{transform_indices = @transform_0, window_bounds = array<i64: 16, 32>}, {transform_indices = @transform_1, window_bounds = array<i64: 32, 64>}, {transform_indices = @transform_2, window_bounds = array<i64: 1, 64>}, {transform_indices = @transform_3, window_bounds = array<i64: 16, 64>}]} {
    %c0 = arith.constant 0 : index
    %c0_0 = arith.constant 0 : index
    %0 = vector.load %arg2[%c0, %c0_0] : memref<16x32xbf16, #tpu.memory_space<vmem>>, vector<16x32xbf16>
    %c0_1 = arith.constant 0 : index
    %c0_2 = arith.constant 0 : index
    %1 = vector.load %arg3[%c0_1, %c0_2] : memref<32x64xbf16, #tpu.memory_space<vmem>>, vector<32x64xbf16>
    %cst = arith.constant dense<0.000000e+00> : vector<16x64xf32>
    %2 = tpu.matmul %0, %1, %cst {dimension_numbers = #tpu.dot_dimension_numbers<[1], [0], [0], [1], [0, 0, 1, 1], [], []>} : vector<16x32xbf16>, vector<32x64xbf16>, vector<16x64xf32> -> vector<16x64xf32>
    %c0_3 = arith.constant 0 : index
    %c0_4 = arith.constant 0 : index
    %3 = vector.load %arg4[%c0_3, %c0_4] : memref<1x64xf32, #tpu.memory_space<vmem>>, vector<1x64xf32>
    %4 = vector.broadcast %3 : vector<1x64xf32> to vector<16x64xf32>
    %5 = arith.addf %2, %4 : vector<16x64xf32>
    %cst_5 = arith.constant 5.000000e-01 : f32
    %6 = vector.broadcast %cst_5 : f32 to vector<16x64xf32>
    %7 = arith.mulf %6, %5 : vector<16x64xf32>
    %cst_6 = arith.constant 4.471500e-02 : f32
    %8 = vector.broadcast %cst_6 : f32 to vector<16x64xf32>
    %9 = arith.mulf %8, %5 : vector<16x64xf32>
    %10 = arith.mulf %9, %5 : vector<16x64xf32>
    %11 = arith.mulf %10, %5 : vector<16x64xf32>
    %12 = arith.addf %5, %11 : vector<16x64xf32>
    %cst_7 = arith.constant 0.797884583 : f32
    %13 = vector.broadcast %cst_7 : f32 to vector<16x64xf32>
    %14 = arith.mulf %13, %12 : vector<16x64xf32>
    %15 = math.tanh %14 : vector<16x64xf32>
    %cst_8 = arith.constant 1.000000e+00 : f32
    %16 = vector.broadcast %cst_8 : f32 to vector<16x64xf32>
    %17 = arith.addf %16, %15 : vector<16x64xf32>
    %18 = arith.mulf %7, %17 : vector<16x64xf32>
    %19 = arith.truncf %18 : vector<16x64xf32> to vector<16x64xbf16>
    %c0_9 = arith.constant 0 : index
    %c0_10 = arith.constant 0 : index
    %20 = vector.load %arg5[%c0_9, %c0_10] : memref<16x64xbf16, #tpu.memory_space<vmem>>, vector<16x64xbf16>
    tpu.vector_store %arg5[%c0_9, %c0_10], %19 {strides = array<i32>} : memref<16x64xbf16, #tpu.memory_space<vmem>>, vector<16x64xbf16>,
    return
  }
  func.func @transform_0(%arg0: i32, %arg1: i32) -> (i32, i32) {
    %c0_i32 = arith.constant 0 : i32
    %c0_i32_0 = arith.constant 0 : i32
    return %arg0, %c0_i32 : i32, i32
  }
  func.func @transform_1(%arg0: i32, %arg1: i32) -> (i32, i32) {
    %c0_i32 = arith.constant 0 : i32
    %c0_i32_0 = arith.constant 0 : i32
    return %c0_i32, %arg1 : i32, i32
  }
  func.func @transform_2(%arg0: i32, %arg1: i32) -> (i32, i32) {
    %c0_i32 = arith.constant 0 : i32
    %c0_i32_0 = arith.constant 0 : i32
    return %c0_i32, %arg1 : i32, i32
  }
  func.func @transform_3(%arg0: i32, %arg1: i32) -> (i32, i32) {
    %c0_i32 = arith.constant 0 : i32
    return %arg0, %arg1 : i32, i32
  }
}

module attributes {stable_mosaic.version = 11 : i64} {
  func.func @_dense_add_ln_kernel(%arg0: i32, %arg1: memref<16x64xbf16, #tpu.memory_space<vmem>>, %arg2: memref<64x32xbf16, #tpu.memory_space<vmem>>, %arg3: memref<1x32xf32, #tpu.memory_space<vmem>>, %arg4: memref<16x32xbf16, #tpu.memory_space<vmem>>, %arg5: memref<1x32xf32, #tpu.memory_space<vmem>>, %arg6: memref<1x32xf32, #tpu.memory_space<vmem>>, %arg7: memref<16x32xbf16, #tpu.memory_space<vmem>>) attributes {dimension_semantics = [#tpu.dimension_semantics<parallel>], iteration_bounds = array<i64: 1>, scalar_prefetch = 0 : i64, scratch_operands = 0 : i64, tpu.core_type = #tpu.core_type<tc>, window_params = [{transform_indices = @transform_0, window_bounds = array<i64: 16, 64>}, {pipeline_mode = #tpu.pipeline_mode<synchronous>, transform_indices = @transform_1, window_bounds = array<i64: 64, 32>}, {pipeline_mode = #tpu.pipeline_mode<synchronous>, transform_indices = @transform_2, window_bounds = array<i64: 1, 32>}, {transform_indices = @transform_3, window_bounds = array<i64: 16, 32>}, {pipeline_mode = #tpu.pipeline_mode<synchronous>, transform_indices = @transform_4, window_bounds = array<i64: 1, 32>}, {pipeline_mode = #tpu.pipeline_mode<synchronous>, transform_indices = @transform_5, window_bounds = array<i64: 1, 32>}, {transform_indices = @transform_6, window_bounds = array<i64: 16, 32>}]} {
    %c0 = arith.constant 0 : index
    %c0_0 = arith.constant 0 : index
    %0 = vector.load %arg1[%c0, %c0_0] : memref<16x64xbf16, #tpu.memory_space<vmem>>, vector<16x64xbf16>
    %c0_1 = arith.constant 0 : index
    %c0_2 = arith.constant 0 : index
    %1 = vector.load %arg2[%c0_1, %c0_2] : memref<64x32xbf16, #tpu.memory_space<vmem>>, vector<64x32xbf16>
    %cst = arith.constant dense<0.000000e+00> : vector<16x32xf32>
    %2 = tpu.matmul %0, %1, %cst {dimension_numbers = #tpu.dot_dimension_numbers<[1], [0], [0], [1], [0, 0, 1, 1], [], []>} : vector<16x64xbf16>, vector<64x32xbf16>, vector<16x32xf32> -> vector<16x32xf32>
    %c0_3 = arith.constant 0 : index
    %c0_4 = arith.constant 0 : index
    %3 = vector.load %arg3[%c0_3, %c0_4] : memref<1x32xf32, #tpu.memory_space<vmem>>, vector<1x32xf32>
    %4 = vector.broadcast %3 : vector<1x32xf32> to vector<16x32xf32>
    %5 = arith.addf %2, %4 : vector<16x32xf32>
    %c0_5 = arith.constant 0 : index
    %c0_6 = arith.constant 0 : index
    %6 = vector.load %arg4[%c0_5, %c0_6] : memref<16x32xbf16, #tpu.memory_space<vmem>>, vector<16x32xbf16>
    %7 = arith.extf %6 : vector<16x32xbf16> to vector<16x32xf32>
    %8 = arith.addf %5, %7 : vector<16x32xf32>
    %cst_7 = arith.constant dense<0.000000e+00> : vector<16xf32>
    %9 = vector.multi_reduction <add>, %8, %cst_7 [1] : vector<16x32xf32> to vector<16xf32>
    %10 = vector.shape_cast %9 : vector<16xf32> to vector<16x1xf32>
    %cst_8 = arith.constant 3.200000e+01 : f32
    %11 = vector.broadcast %cst_8 : f32 to vector<16x1xf32>
    %12 = arith.divf %10, %11 : vector<16x1xf32>
    %13 = vector.broadcast %12 : vector<16x1xf32> to vector<16x32xf32>
    %14 = arith.subf %8, %13 : vector<16x32xf32>
    %15 = arith.mulf %14, %14 : vector<16x32xf32>
    %cst_9 = arith.constant dense<0.000000e+00> : vector<16xf32>
    %16 = vector.multi_reduction <add>, %15, %cst_9 [1] : vector<16x32xf32> to vector<16xf32>
    %17 = vector.shape_cast %16 : vector<16xf32> to vector<16x1xf32>
    %cst_10 = arith.constant 3.200000e+01 : f32
    %18 = vector.broadcast %cst_10 : f32 to vector<16x1xf32>
    %19 = arith.divf %17, %18 : vector<16x1xf32>
    %20 = vector.broadcast %12 : vector<16x1xf32> to vector<16x32xf32>
    %21 = arith.subf %8, %20 : vector<16x32xf32>
    %cst_11 = arith.constant 9.99999996E-13 : f32
    %22 = vector.broadcast %cst_11 : f32 to vector<16x1xf32>
    %23 = arith.addf %19, %22 : vector<16x1xf32>
    %24 = math.rsqrt %23 : vector<16x1xf32>
    %25 = vector.broadcast %24 : vector<16x1xf32> to vector<16x32xf32>
    %26 = arith.mulf %21, %25 : vector<16x32xf32>
    %c0_12 = arith.constant 0 : index
    %c0_13 = arith.constant 0 : index
    %27 = vector.load %arg5[%c0_12, %c0_13] : memref<1x32xf32, #tpu.memory_space<vmem>>, vector<1x32xf32>
    %28 = vector.broadcast %27 : vector<1x32xf32> to vector<16x32xf32>
    %29 = arith.mulf %26, %28 : vector<16x32xf32>
    %c0_14 = arith.constant 0 : index
    %c0_15 = arith.constant 0 : index
    %30 = vector.load %arg6[%c0_14, %c0_15] : memref<1x32xf32, #tpu.memory_space<vmem>>, vector<1x32xf32>
    %31 = vector.broadcast %30 : vector<1x32xf32> to vector<16x32xf32>
    %32 = arith.addf %29, %31 : vector<16x32xf32>
    %33 = arith.truncf %32 : vector<16x32xf32> to vector<16x32xbf16>
    %c0_16 = arith.constant 0 : index
    %c0_17 = arith.constant 0 : index
    %34 = vector.load %arg7[%c0_16, %c0_17] : memref<16x32xbf16, #tpu.memory_space<vmem>>, vector<16x32xbf16>
    tpu.vector_store %arg7[%c0_16, %c0_17], %33 {strides = array<i32>} : memref<16x32xbf16, #tpu.memory_space<vmem>>, vector<16x32xbf16>,
    return
  }
  func.func @transform_0(%arg0: i32) -> (i32, i32) {
    %c0_i32 = arith.constant 0 : i32
    %c0_i32_0 = arith.constant 0 : i32
    return %arg0, %c0_i32 : i32, i32
  }
  func.func @transform_1(%arg0: i32) -> (i32, i32) {
    %c0_i32 = arith.constant 0 : i32
    %c0_i32_0 = arith.constant 0 : i32
    %c0_i32_1 = arith.constant 0 : i32
    return %c0_i32, %c0_i32_0 : i32, i32
  }
  func.func @transform_2(%arg0: i32) -> (i32, i32) {
    %c0_i32 = arith.constant 0 : i32
    %c0_i32_0 = arith.constant 0 : i32
    %c0_i32_1 = arith.constant 0 : i32
    return %c0_i32, %c0_i32_0 : i32, i32
  }
  func.func @transform_3(%arg0: i32) -> (i32, i32) {
    %c0_i32 = arith.constant 0 : i32
    %c0_i32_0 = arith.constant 0 : i32
    return %arg0, %c0_i32 : i32, i32
  }
  func.func @transform_4(%arg0: i32) -> (i32, i32) {
    %c0_i32 = arith.constant 0 : i32
    %c0_i32_0 = arith.constant 0 : i32
    %c0_i32_1 = arith.constant 0 : i32
    return %c0_i32, %c0_i32_0 : i32, i32
  }
  func.func @transform_5(%arg0: i32) -> (i32, i32) {
    %c0_i32 = arith.constant 0 : i32
    %c0_i32_0 = arith.constant 0 : i32
    %c0_i32_1 = arith.constant 0 : i32
    return %c0_i32, %c0_i32_0 : i32, i32
  }
  func.func @transform_6(%arg0: i32) -> (i32, i32) {
    %c0_i32 = arith.constant 0 : i32
    %c0_i32_0 = arith.constant 0 : i32
    return %arg0, %c0_i32 : i32, i32
  }
}

module attributes {stable_mosaic.version = 11 : i64} {
  func.func @_pooler_cls_kernel(%arg0: memref<2x32xbf16, #tpu.memory_space<vmem>>, %arg1: memref<32x32xbf16, #tpu.memory_space<vmem>>, %arg2: memref<1x32xf32, #tpu.memory_space<vmem>>, %arg3: memref<32x2xbf16, #tpu.memory_space<vmem>>, %arg4: memref<1x2xf32, #tpu.memory_space<vmem>>, %arg5: memref<2x2xf32, #tpu.memory_space<vmem>>) attributes {dimension_semantics = [], scalar_prefetch = 0 : i64, scratch_operands = 0 : i64, tpu.core_type = #tpu.core_type<tc>} {
    %c0 = arith.constant 0 : index
    %c0_0 = arith.constant 0 : index
    %0 = vector.load %arg0[%c0, %c0_0] : memref<2x32xbf16, #tpu.memory_space<vmem>>, vector<2x32xbf16>
    %c0_1 = arith.constant 0 : index
    %c0_2 = arith.constant 0 : index
    %1 = vector.load %arg1[%c0_1, %c0_2] : memref<32x32xbf16, #tpu.memory_space<vmem>>, vector<32x32xbf16>
    %cst = arith.constant dense<0.000000e+00> : vector<2x32xf32>
    %2 = tpu.matmul %0, %1, %cst {dimension_numbers = #tpu.dot_dimension_numbers<[1], [0], [0], [1], [0, 0, 1, 1], [], []>} : vector<2x32xbf16>, vector<32x32xbf16>, vector<2x32xf32> -> vector<2x32xf32>
    %c0_3 = arith.constant 0 : index
    %c0_4 = arith.constant 0 : index
    %3 = vector.load %arg2[%c0_3, %c0_4] : memref<1x32xf32, #tpu.memory_space<vmem>>, vector<1x32xf32>
    %4 = vector.broadcast %3 : vector<1x32xf32> to vector<2x32xf32>
    %5 = arith.addf %2, %4 : vector<2x32xf32>
    %6 = math.tanh %5 : vector<2x32xf32>
    %7 = arith.truncf %6 : vector<2x32xf32> to vector<2x32xbf16>
    %c0_5 = arith.constant 0 : index
    %c0_6 = arith.constant 0 : index
    %8 = vector.load %arg3[%c0_5, %c0_6] : memref<32x2xbf16, #tpu.memory_space<vmem>>, vector<32x2xbf16>
    %cst_7 = arith.constant dense<0.000000e+00> : vector<2x2xf32>
    %9 = tpu.matmul %7, %8, %cst_7 {dimension_numbers = #tpu.dot_dimension_numbers<[1], [0], [0], [1], [0, 0, 1, 1], [], []>} : vector<2x32xbf16>, vector<32x2xbf16>, vector<2x2xf32> -> vector<2x2xf32>
    %c0_8 = arith.constant 0 : index
    %c0_9 = arith.constant 0 : index
    %10 = vector.load %arg4[%c0_8, %c0_9] : memref<1x2xf32, #tpu.memory_space<vmem>>, vector<1x2xf32>
    %11 = vector.broadcast %10 : vector<1x2xf32> to vector<2x2xf32>
    %12 = arith.addf %9, %11 : vector<2x2xf32>
    %c0_10 = arith.constant 0 : index
    %c0_11 = arith.constant 0 : index
    %13 = vector.load %arg5[%c0_10, %c0_11] : memref<2x2xf32, #tpu.memory_space<vmem>>, vector<2x2xf32>
    tpu.vector_store %arg5[%c0_10, %c0_11], %12 {strides = array<i32>} : memref<2x2xf32, #tpu.memory_space<vmem>>, vector<2x2xf32>,
    return
  }
}

</mosaic_0001>

<bundles_post_ra>
// kernel: bert_forward.12
= control target key start
LH: loop header
LB: loop body
LE: loop exit
PB: predicated region body
PF: predicated region fallthrough
CT: control target
= control target key end

     0   :  { %vm16_vm0 = vcmask 261120   ;;  %vm70_vm1 = vcmask 257024   ;;  %s129_s0 = inlined_call_operand.vmem [shape: f32[16,32], index: 0, kind: input, shape index: {}]   ;;  %s130_s1 = inlined_call_operand.vmem [shape: f32[1,32], index: 1, kind: input, shape index: {}]   ;;  %s131_s2 = inlined_call_operand.vmem [shape: f32[1,32], index: 2, kind: input, shape index: {}]   ;;  %s132_s3 = inlined_call_operand.vmem [shape: bf16[16,32], index: 3, kind: output, shape index: {}]  }
   0x1   :  { %v14_v0 = vld [vmem:[%s129_s0] sm:$0xff]  ;;  %v15_v1 = vld [vmem:[%s129_s0 + $0x8] sm:$0xff] }
   0x2   :  { %v17_v2 = vsel %vm16_vm0, %v14_v0, 0.0  ;;  %v20_v3 = vsel %vm16_vm0, %v15_v1, 0.0  ;;  %v77_v21 = vld [vmem:[%s130_s1] ss:$0 sm:$0xff] }
   0x3   :  { %18 = vadd.xlane.f32.xlu0 %v17_v2  ;;  %v78_v23 = vld [vmem:[%s131_s2] ss:$0 sm:$0xff] }
   0x7   :  { %21 = vadd.xlane.f32.xlu0 %v20_v3 }
  0x90   :  { %v19_v4 = vpop.xlane.xlu0 %18 }
  0x91   :  { %v24_v5 = vmul.f32 0.03125, %v19_v4 }
  0x93   :  { %v26_v6 = vsub.f32 %v14_v0, %v24_v5 }
  0x94   :  { %v22_v7 = vpop.xlane.xlu0 %21 }
  0x95   :  { %v25_v8 = vmul.f32 0.03125, %v22_v7  ;;  %v28_v9 = vmul.f32 %v26_v6, %v26_v6 }
  0x97   :  { %v27_v10 = vsub.f32 %v15_v1, %v25_v8  ;;  %v30_v11 = vsel %vm16_vm0, %v28_v9, 0.0 }
  0x98   :  { %31 = vadd.xlane.f32.xlu1 %v30_v11 }
  0x99   :  { %v29_v12 = vmul.f32 %v27_v10, %v27_v10 }
  0x9b   :  { %v33_v13 = vsel %vm16_vm0, %v29_v12, 0.0 }
  0x9c   :  { %34 = vadd.xlane.f32.xlu1 %v33_v13 }
 0x125   :  { %v32_v14 = vpop.xlane.xlu1 %31 }
 0x126   :  { %v36_v15 = vmul.f32 0.03125, %v32_v14 }
 0x128   :  { %v38_v16 = vadd.f32 1e-12, %v36_v15 }
 0x129   :  { %v35_v17 = vpop.xlane.xlu1 %34 }
 0x12a   :  { %83 = vrsqrt.f32 %v38_v16  ;;  %v37_v18 = vmul.f32 0.03125, %v35_v17 }
 0x12c   :  { %v39_v19 = vadd.f32 1e-12, %v37_v18 }
 0x12e   :  { %85 = vrsqrt.f32 %v39_v19 }
 0x134   :  { %v84_v20 = vpop.eup %83 }
 0x135   :  { %v42_v22 = vmul.f32 %v84_v20, %v26_v6 }
 0x137   :  { %v51_v24 = vmul.f32 %v77_v21, %v42_v22 }
 0x138   :  { %v86_v25 = vpop.eup %85 }
 0x139   :  { %v60_v26 = vadd.f32 %v78_v23, %v51_v24  ;;  %v43_v27 = vmul.f32 %v86_v25, %v27_v10 }
 0x13b   :  { %v81_v28 = vpack.c.bf16 %v60_v26, %v60_v26  ;;  %v52_v29 = vmul.f32 %v77_v21, %v43_v27 }
 0x13d   :  { %71 = vst.msk [vmem:[%s132_s3] sm:$0xf] %vm70_vm1, %v81_v28  ;;  %v61_v30 = vadd.f32 %v78_v23, %v52_v29 }
 0x13f   :  { %v82_v31 = vpack.c.bf16 %v61_v30, %v61_v30 }
 0x141   :  { %72 = vst.msk [vmem:[%s132_s3 + $0x4] sm:$0xf] %vm70_vm1, %v82_v31 }

// kernel: bert_forward.13
= control target key start
LH: loop header
LB: loop body
LE: loop exit
PB: predicated region body
PF: predicated region fallthrough
CT: control target
= control target key end

     0   :  { %v130_v0 = vmov 0.0   ;;  %vm131_vm0 = vmmov 0   ;;  %vm45_vm1 = vcmask 261120   ;;  %vm98_vm2 = vcmask 781312   ;;  %s170_s1 = inlined_call_operand.vmem [shape: bf16[32,96], index: 1, kind: input, shape index: {}]   ;;  %s171_s0 = inlined_call_operand.vmem [shape: bf16[16,32], index: 0, kind: input, shape index: {}]   ;;  %s172_s2 = inlined_call_operand.vmem [shape: f32[1,96], index: 2, kind: input, shape index: {}]   ;;  %s173_s3 = inlined_call_operand.vmem [shape: bf16[16,96], index: 3, kind: output, shape index: {}]  }
   0x1   :  { %117 = vmatprep.subr.bf16.mxu0 %v130_v0  ;;  %v127_v1 = vld [vmem:[%s170_s1] sm:$0xff]   ;;  %121 = vmatprep.mubr.msk.bf16.mxu0 %vm131_vm0, %v130_v0  ;;  %v128_v2 = vld [vmem:[%s170_s1 + $0x8] sm:$0xff]  }
   0x2   :  { %118 = vmatpush3.bf16.msra.mxu0 %v127_v1  ;;  %v129_v3 = vld [vmem:[%s171_s0] sm:$0xff]  }
   0x3   :  { %119 = vmatprep.subr.bf16.mxu0 %v130_v0  ;;  %v105_v4 = vld [vmem:[%s172_s2] ss:$0 sm:$0xff] }
   0x6   :  { %120 = vmatpush3.bf16.msra.mxu0 %v128_v2 }
   0x9   :  { %122 = vmatmul.mubr.msk.bf16.vlgmr.msra.gmra.mrb[0].mxu0 %vm45_vm1, %v129_v3 }
  0xdc   :  { %v83_v5 = vpop.f32.mrb[0].mxu0 }
  0xdd   :  { %v84_v6 = vadd.f32 %v105_v4, %v83_v5  ;;  %v123_v7 = vpop.f32.mrb[1].mxu0 }
  0xde   :  { %v86_v8 = vpop.f32.mrb[2].mxu0 }
  0xdf   :  { %v112_v9 = vpack.c.bf16 %v84_v6, %v84_v6  ;;  %v87_v10 = vadd.f32 %v105_v4, %v86_v8  ;;  %v124_v11 = vpop.f32.mrb[3].mxu0 }
  0xe1   :  { %99 = vst.msk [vmem:[%s173_s3] sm:$0xf] %vm98_vm2, %v112_v9  ;;  %v113_v12 = vpack.c.bf16 %v87_v10, %v87_v10 }
  0xe3   :  { %100 = vst.msk [vmem:[%s173_s3 + $0x4] sm:$0xf] %vm98_vm2, %v113_v12 }

// kernel: bert_forward.15
= control target key start
LH: loop header
LB: loop body
LE: loop exit
PB: predicated region body
PF: predicated region fallthrough
CT: control target
= control target key end

     0   :  { %v200_v0 = vmov 0.0   ;;  %vm201_vm0 = vmmov 0   ;;  %vm54_vm1 = vcmask 261120   ;;  %vm158_vm2 = vcmask 257024   ;;  %s269_s1 = inlined_call_operand.vmem [shape: bf16[32,32], index: 1, kind: input, shape index: {}]   ;;  %s270_s0 = inlined_call_operand.vmem [shape: bf16[16,32], index: 0, kind: input, shape index: {}]   ;;  %s271_s3 = inlined_call_operand.vmem [shape: bf16[16,32], index: 3, kind: input, shape index: {}]   ;;  %s272_s2 = inlined_call_operand.vmem [shape: f32[1,32], index: 2, kind: input, shape index: {}]   ;;  %s273_s4 = inlined_call_operand.vmem [shape: f32[1,32], index: 4, kind: input, shape index: {}]   ;;  %s274_s5 = inlined_call_operand.vmem [shape: f32[1,32], index: 5, kind: input, shape index: {}]   ;;  %s275_s6 = inlined_call_operand.vmem [shape: bf16[16,32], index: 6, kind: output, shape index: {}]  }
   0x1   :  { %183 = vmatprep.subr.bf16.mxu0 %v200_v0  ;;  %v193_v1 = vld [vmem:[%s269_s1] sm:$0xff]   ;;  %187 = vmatprep.mubr.msk.bf16.mxu0 %vm201_vm0, %v200_v0  ;;  %v194_v2 = vld [vmem:[%s269_s1 + $0x8] sm:$0xff]  }
   0x2   :  { %184 = vmatpush3.bf16.msra.mxu0 %v193_v1  ;;  %v195_v3 = vld [vmem:[%s270_s0] sm:$0xff]  }
   0x3   :  { %185 = vmatprep.subr.bf16.mxu0 %v200_v0  ;;  %v177_v4 = vld [vmem:[%s271_s3] sm:$0xff]  }
   0x4   :  { %v165_v5 = vld [vmem:[%s272_s2] ss:$0 sm:$0xff]  ;;  %v178_v6 = vunpack.c.l.bf16 %v177_v4  ;;  %v179_v10 = vunpack.c.h.bf16 %v177_v4 }
   0x5   :  { %v170_v35 = vld [vmem:[%s273_s4] ss:$0 sm:$0xff] }
   0x6   :  { %186 = vmatpush3.bf16.msra.mxu0 %v194_v2  ;;  %v171_v37 = vld [vmem:[%s274_s5] ss:$0 sm:$0xff] }
   0x9   :  { %188 = vmatmul.mubr.msk.bf16.vlgmr.msra.gmra.mrb[0].mxu0 %vm54_vm1, %v195_v3 }
  0xdc   :  { %v92_v7 = vpop.f32.mrb[0].mxu0 }
  0xdd   :  { %v93_v8 = vadd.f32 %v165_v5, %v92_v7  ;;  %v189_v9 = vpop.f32.mrb[1].mxu0 }
  0xde   :  { %v95_v11 = vpop.f32.mrb[2].mxu0 }
  0xdf   :  { %v96_v12 = vadd.f32 %v165_v5, %v95_v11  ;;  %v190_v13 = vpop.f32.mrb[3].mxu0  ;;  %v103_v14 = vadd.f32 %v178_v6, %v93_v8 }
  0xe1   :  { %v105_v15 = vsel %vm54_vm1, %v103_v14, 0.0  ;;  %v104_v16 = vadd.f32 %v179_v10, %v96_v12 }
  0xe2   :  { %106 = vadd.xlane.f32.xlu0 %v105_v15 }
  0xe3   :  { %v108_v17 = vsel %vm54_vm1, %v104_v16, 0.0 }
  0xe6   :  { %109 = vadd.xlane.f32.xlu0 %v108_v17 }
 0x16f   :  { %v107_v18 = vpop.xlane.xlu0 %106 }
 0x170   :  { %v112_v19 = vmul.f32 0.03125, %v107_v18 }
 0x172   :  { %v114_v20 = vsub.f32 %v103_v14, %v112_v19 }
 0x173   :  { %v110_v21 = vpop.xlane.xlu0 %109 }
 0x174   :  { %v113_v22 = vmul.f32 0.03125, %v110_v21  ;;  %v116_v23 = vmul.f32 %v114_v20, %v114_v20 }
 0x176   :  { %v115_v24 = vsub.f32 %v104_v16, %v113_v22  ;;  %v118_v25 = vsel %vm54_vm1, %v116_v23, 0.0 }
 0x177   :  { %119 = vadd.xlane.f32.xlu1 %v118_v25 }
 0x178   :  { %v117_v26 = vmul.f32 %v115_v24, %v115_v24 }
 0x17a   :  { %v121_v27 = vsel %vm54_vm1, %v117_v26, 0.0 }
 0x17b   :  { %122 = vadd.xlane.f32.xlu1 %v121_v27 }
 0x204   :  { %v120_v28 = vpop.xlane.xlu1 %119 }
 0x205   :  { %v124_v29 = vmul.f32 0.03125, %v120_v28 }
 0x207   :  { %v126_v30 = vadd.f32 1e-12, %v124_v29 }
 0x208   :  { %v123_v31 = vpop.xlane.xlu1 %122 }
 0x209   :  { %196 = vrsqrt.f32 %v126_v30  ;;  %v125_v32 = vmul.f32 0.03125, %v123_v31 }
 0x20b   :  { %v127_v33 = vadd.f32 1e-12, %v125_v32 }
 0x20d   :  { %198 = vrsqrt.f32 %v127_v33 }
 0x213   :  { %v197_v34 = vpop.eup %196 }
 0x214   :  { %v130_v36 = vmul.f32 %v197_v34, %v114_v20 }
 0x216   :  { %v139_v38 = vmul.f32 %v170_v35, %v130_v36 }
 0x217   :  { %v199_v39 = vpop.eup %198 }
 0x218   :  { %v148_v40 = vadd.f32 %v171_v37, %v139_v38  ;;  %v131_v41 = vmul.f32 %v199_v39, %v115_v24 }
 0x21a   :  { %v174_v42 = vpack.c.bf16 %v148_v40, %v148_v40  ;;  %v140_v43 = vmul.f32 %v170_v35, %v131_v41 }
 0x21c   :  { %159 = vst.msk [vmem:[%s275_s6] sm:$0xf] %vm158_vm2, %v174_v42  ;;  %v149_v44 = vadd.f32 %v171_v37, %v140_v43 }
 0x21e   :  { %v175_v45 = vpack.c.bf16 %v149_v44, %v149_v44 }
 0x220   :  { %160 = vst.msk [vmem:[%s275_s6 + $0x4] sm:$0xf] %vm158_vm2, %v175_v45 }

// kernel: bert_forward.14
= control target key start
LH: loop header
LB: loop body
LE: loop exit
PB: predicated region body
PF: predicated region fallthrough
CT: control target
= control target key end

     0   :  { %s980_s9 = smov 0   ;;  %s982_s10 = smov 0   ;;  %s1106_s0 = inlined_call_operand.vmem [shape: bf16[2,8,96], index: 0, kind: input, shape index: {}]   ;;  %s1107_s1 = inlined_call_operand.vmem [shape: f32[2,1,8], index: 1, kind: input, shape index: {}]   ;;  %s1108_s2 = inlined_call_operand.vmem [shape: bf16[2,8,32], index: 2, kind: output, shape index: {}]  }
   0x1   :  { %s984_s11 = smov 0  }
   0x2 LB: > { %s24_s12 = sadd.s32 1, %s943_s10  ;;  %p771_p0 = scmp.ge.s32.totalorder %s947_s11, 1  ;;  %s947_s11 = sphi %s984_s11, %s12_s11   ;;  %s943_s10 = sphi %s982_s10, %s1110_s10   ;;  %s939_s9 = sphi %s980_s9, %s1109_s9  }
   0x3   : > { %p26_p1 = scmp.ge.s32.totalorder %s24_s12, 2  ;;  %p133_p2 = scmp.lt.s32.totalorder %s947_s11, 3 }
   0x5   : > { %s1112_s12 = smov (%p26_p1, %s24_s12), 0  ;;  %p134_p3 = pnand %p771_p0, %p133_p2 }
   0x6   : > { %p159_p4 = scmp.lt.s32.totalorder (!%p134_p3), %s939_s9, 1  ;;  %v949_v0 = vmov (!%p134_p3), 0.0   ;;  %vm950_vm0 = vmmov (!%p134_p3), 0   ;;  %s951_s17 = smov (!%p134_p3), 96   ;;  %vm193_vm1 = vcmask (!%p134_p3), 64512   ;;  %vm257_vm2 = vcmask (!%p134_p3), 1043456  }
   0x7   : > { %137 = sbr.rel (%p134_p3) target bundleno = 1600 (0x640), region = 28  ;;  %814 = vmatprep.subr.bf16.mxu0 (!%p134_p3), %v949_v0  ;;  %816 = vmatprep.mubr.msk.bf16.mxu0 (!%p134_p3), %vm950_vm0, %v949_v0  ;;  %s952_s18 = smov (!%p134_p3), 64   ;;  %vm302_vm3 = vcmask (!%p134_p3), 60416   ;;  %vm429_vm4 = vcmask (!%p134_p3), 126016   ;;  %vm556_vm5 = vcmask (!%p134_p3), 191616   ;;  %vm683_vm6 = vcmask (!%p134_p3), 257216  }
   0x8   : > { %820 = vmatprep.subr.bf16.mxu1 (!%p134_p3), %v949_v0  ;;  %822 = vmatprep.mubr.msk.bf16.mxu1 (!%p134_p3), %vm950_vm0, %v949_v0  ;;  %s953_s19 = smov (!%p134_p3), 88   ;;  %s954_s23 = smov (!%p134_p3), 72  }
   0x9   : > { %s955_s24 = smov (!%p134_p3), 120   ;;  %s956_s25 = smov (!%p134_p3), 80  }
   0xa   : > { %s957_s26 = smov (!%p134_p3), 112   ;;  %s958_s27 = smov (!%p134_p3), 104  }
   0xb   : > { %s959_s3 = smov (!%p134_p3), 56   ;;  %s960_s4 = smov (!%p134_p3), 48  }
   0xc   : > { %s961_s5 = smov (!%p134_p3), 40   ;;  %s962_s6 = smov (!%p134_p3), 8  }
   0xd   : > { %s963_s7 = smov (!%p134_p3), 16   ;;  %s964_s8 = smov (!%p134_p3), 24  }
   0xe   : > { %s1114_s9 = smov (!%p159_p4, %s939_s9), 1 }
   0xf   : > { %s772_s13 = sshll.u32 %s1114_s9, 2  ;;  %s165_s22 = scalar_lea.vmem %s1107_s1, %s1114_s9 }
  0x10   : > { %s1012_s16 = scalar_lea.vmem %s1106_s0, %s772_s13  ;;  %v1029_v6 = vld [vmem:[%s165_s22] ss:$0 sm:$0xff]  ;;  %s1067_s30 = scalar_lea.vmem %s1108_s2, %s772_s13 }
  0x11   : > { %v902_v1 = vld [vmem:[%s1012_s16] ss:$0 sps:$4 sm:$0xff]  }
  0x12   : > { %191 = vrot.lane.b32.xlu0 %v902_v1, %s951_s17  ;;  %v180_v4 = vld [vmem:[%s1012_s16] sm:$0xf]  ;;  %252 = vrot.lane.b32.xlu1 %v902_v1, %s952_s18 }
  0x13   : > { %v1022_v5 = vld [vmem:[%s1012_s16] ss:$0 sps:$4 sm:$0xff]  }
  0x14   : > { %v1034_v13 = vld [vmem:[%s1012_s16] ss:$0 sps:$4 sm:$0xff]  }
  0x15   : > { %v904_v21 = vld [vmem:[%s1012_s16] ss:$0 sps:$4 sm:$0xff]  }
  0x16   : > { %314 = vrot.lane.b32.xlu1 %v1022_v5, %s953_s19  ;;  %v1042_v22 = vld [vmem:[%s1012_s16] ss:$0 sps:$4 sm:$0xff]  }
  0x17   : > { %v907_v23 = vld [vmem:[%s1012_s16] ss:$0 sps:$4 sm:$0xff]  }
  0x18   : > { %v908_v24 = vld [vmem:[%s1012_s16] ss:$0 sps:$4 sm:$0xff]  }
  0x84   : > { %v192_v2 = vpop.permute.xlu0 %191  ;;  %v253_v14 = vpop.permute.xlu1 %252 }
  0x85   : > { %v198_v3 = vsel %vm193_vm1, %v192_v2, 0  ;;  %v259_v15 = vsel %vm257_vm2, %v253_v14, 0 }
  0x86   : > { %815 = vmatpush3.bf16.xpose.msra.mxu0 %v198_v3  ;;  %821 = vmatpush3.bf16.msra.mxu1 %v259_v15 }
  0x87   : > { %832 = vmatprep.subr.bf16.mxu0 %v949_v0  ;;  %826 = vmatprep.subr.bf16.mxu1 %v949_v0 }
  0x88   : > { %v315_v25 = vpop.permute.xlu1 %314 }
  0x89   : > { %v320_v31 = vsel %vm193_vm1, %v315_v25, 0 }
  0x8d   : > { %817 = vmatmul.mubr.msk.bf16.vlgmr.msra.gmra.mrb[0].mxu0 %vm193_vm1, %v180_v4 }
  0x8e   : > { %834 = vmatprep.mubr.msk.bf16.mxu0 %vm950_vm0, %v949_v0 }
 0x160   : > { %v234_v7 = vpop.f32.mrb[0].mxu0 }
 0x161   : > { %v235_v8 = vadd.f32 %v1029_v6, %v234_v7  ;;  %v818_v9 = vpop.f32.mrb[1].mxu0 }
 0x162   : > { %v237_v10 = vpop.f32.mrb[2].mxu0 }
 0x163   : > { %v819_v11 = vpop.f32.mrb[3].mxu0  ;;  %v240_v12 = vsel %vm193_vm1, %v235_v8, -inf }
 0x164   : > { %241 = vmax.xlane.f32.xlu0 %v240_v12 }
 0x17a   : > { %568 = vrot.lane.b32.xlu0 %v1034_v13, %s954_s23 }
 0x1f1   : > { %v242_v16 = vpop.xlane.xlu0 %241 }
 0x1f2   : > { %v243_v17 = vsub.f32 %v235_v8, %v242_v16 }
 0x1f4   : > { %v244_v18 = vmul.f32 1.442695, %v243_v17 }
 0x1f5   : > { %v569_v34 = vpop.permute.xlu0 %568 }
 0x1f6   : > { %909 = vpow2.f32 %v244_v18  ;;  %v574_v36 = vsel %vm193_vm1, %v569_v34, 0 }
 0x200   : > { %v910_v19 = vpop.eup %909 }
 0x201   : > { %v246_v20 = vsel %vm193_vm1, %v910_v19, 0.0 }
 0x202   : > { %247 = vadd.xlane.f32.xlu1 %v246_v20 }
 0x213   : > { %309 = vrot.lane.b32.xlu1 %v904_v21, %s955_s24 }
 0x217   : > { %441 = vrot.lane.b32.xlu1 %v1042_v22, %s956_s25 }
 0x21b   : > { %436 = vrot.lane.b32.xlu1 %v907_v23, %s957_s26 }
 0x21f   : > { %563 = vrot.lane.b32.xlu1 %v908_v24, %s958_s27 }
 0x28f   : > { %v248_v26 = vpop.xlane.xlu1 %247 }
 0x290   : > { %911 = vrcp.f32 %v248_v26 }
 0x293   : > { %v310_v29 = vpop.permute.xlu1 %309 }
 0x297   : > { %v442_v32 = vpop.permute.xlu1 %441 }
 0x298   : > { %v447_v33 = vsel %vm193_vm1, %v442_v32, 0 }
 0x29a   : > { %v912_v27 = vpop.eup %911 }
 0x29b   : > { %v250_v28 = vmul.f32 %v912_v27, %v910_v19  ;;  %v437_v35 = vpop.permute.xlu1 %436 }
 0x29d   : > { %v251_v30 = vpack.c.bf16 %v250_v28, %v250_v28 }
 0x29f   : > { %823 = vmatmul.mubr.msk.bf16.vlgmr.msra.gmra.mrb[0].mxu1 %vm193_vm1, %v251_v30  ;;  %v564_v37 = vpop.permute.xlu1 %563 }
 0x2a0   : > { %827 = vmatpush3.bf16.xpose.msra.mxu1 %v320_v31  ;;  %828 = vmatprep.mubr.msk.bf16.mxu1 %vm950_vm0, %v949_v0 }
 0x2a1   : > { %838 = vmatprep.subr.bf16.mxu1 %v949_v0 }
 0x2a7   : > { %829 = vmatmul.mubr.msk.bf16.vlgmr.msra.gmra.mrb[4].mxu1 %vm193_vm1, %v310_v29 }
 0x2a8   : > { %839 = vmatpush3.bf16.xpose.msra.mxu1 %v447_v33  ;;  %840 = vmatprep.mubr.msk.bf16.mxu1 %vm950_vm0, %v949_v0 }
 0x2a9   : > { %850 = vmatprep.subr.bf16.mxu1 %v949_v0 }
 0x2af   : > { %841 = vmatmul.mubr.msk.bf16.vlgmr.msra.gmra.mrb[8].mxu1 %vm193_vm1, %v437_v35 }
 0x2b0   : > { %851 = vmatpush3.bf16.xpose.msra.mxu1 %v574_v36  ;;  %852 = vmatprep.mubr.msk.bf16.mxu1 %vm950_vm0, %v949_v0 }
 0x2b7   : > { %853 = vmatmul.mubr.msk.bf16.vlgmr.msra.gmra.mrb[12].mxu1 %vm193_vm1, %v564_v37 }
 0x372   : > { %v295_v38 = vpop.f32.mrb[0].mxu1 }
 0x373   : > { %v301_v39 = vpack.c.bf16 %v295_v38, %v295_v38  ;;  %v824_v40 = vpop.f32.mrb[1].mxu1 }
 0x374   : > { %v298_v41 = vpop.f32.mrb[2].mxu1 }
 0x375   : > { %303 = vst.msk [vmem:[%s1067_s30] sm:$0xf] %vm302_vm3, %v301_v39  ;;  %v825_v42 = vpop.f32.mrb[3].mxu1 }
 0x37a   : > { %v356_v43 = vpop.f32.mrb[4].mxu1 }
 0x37b   : > { %v357_v44 = vadd.f32 %v1029_v6, %v356_v43  ;;  %v830_v45 = vpop.f32.mrb[5].mxu1 }
 0x37c   : > { %v359_v46 = vpop.f32.mrb[6].mxu1 }
 0x37d   : > { %v831_v47 = vpop.f32.mrb[7].mxu1  ;;  %v362_v48 = vsel %vm193_vm1, %v357_v44, -inf }
 0x37e   : > { %363 = vmax.xlane.f32.xlu1 %v362_v48 }
 0x382   : > { %v483_v49 = vpop.f32.mrb[8].mxu1 }
 0x383   : > { %v484_v50 = vadd.f32 %v1029_v6, %v483_v49  ;;  %v842_v51 = vpop.f32.mrb[9].mxu1 }
 0x384   : > { %v486_v52 = vpop.f32.mrb[10].mxu1 }
 0x385   : > { %v489_v53 = vsel %vm193_vm1, %v484_v50, -inf  ;;  %v843_v54 = vpop.f32.mrb[11].mxu1 }
 0x386   : > { %490 = vmax.xlane.f32.xlu0 %v489_v53 }
 0x38a   : > { %v610_v55 = vpop.f32.mrb[12].mxu1 }
 0x38b   : > { %v611_v56 = vadd.f32 %v1029_v6, %v610_v55  ;;  %v854_v57 = vpop.f32.mrb[13].mxu1 }
 0x38c   : > { %v613_v58 = vpop.f32.mrb[14].mxu1 }
 0x38d   : > { %v616_v59 = vsel %vm193_vm1, %v611_v56, -inf  ;;  %v855_v60 = vpop.f32.mrb[15].mxu1 }
 0x38e   : > { %617 = vmax.xlane.f32.xlu1 %v616_v59 }
 0x40b   : > { %v364_v61 = vpop.xlane.xlu1 %363 }
 0x40c   : > { %v365_v62 = vsub.f32 %v357_v44, %v364_v61 }
 0x40e   : > { %v366_v63 = vmul.f32 1.442695, %v365_v62 }
 0x410   : > { %913 = vpow2.f32 %v366_v63 }
 0x413   : > { %v491_v9 = vpop.xlane.xlu0 %490 }
 0x414   : > { %v492_v10 = vsub.f32 %v484_v50, %v491_v9 }
 0x416   : > { %v493_v11 = vmul.f32 1.442695, %v492_v10 }
 0x41a   : > { %v914_v1 = vpop.eup %913 }
 0x41b   : > { %v618_v2 = vpop.xlane.xlu1 %617  ;;  %v368_v3 = vsel %vm193_vm1, %v914_v1, 0.0 }
 0x41c   : > { %v619_v4 = vsub.f32 %v611_v56, %v618_v2  ;;  %369 = vadd.xlane.f32.xlu1 %v368_v3 }
 0x41e   : > { %v620_v7 = vmul.f32 1.442695, %v619_v4 }
 0x420   : > { %915 = vpow2.f32 %v620_v7 }
 0x421   : > { %917 = vpow2.f32 %v493_v11 }
 0x42a   : > { %v916_v8 = vpop.eup %915 }
 0x42b   : > { %v622_v6 = vsel %vm193_vm1, %v916_v8, 0.0  ;;  %v918_v12 = vpop.eup %917 }
 0x42c   : > { %623 = vadd.xlane.f32.xlu0 %v622_v6  ;;  %v495_v14 = vsel %vm193_vm1, %v918_v12, 0.0 }
 0x42d   : > { %374 = vrot.lane.b32.xlu1 %v1022_v5, %s959_s3 }
 0x442   : > { %501 = vrot.lane.b32.xlu0 %v1042_v22, %s960_s4 }
 0x451   : > { %496 = vadd.xlane.f32.xlu1 %v495_v14 }
 0x462   : > { %628 = vrot.lane.b32.xlu1 %v1034_v13, %s961_s5 }
 0x4a9   : > { %v370_v15 = vpop.xlane.xlu1 %369 }
 0x4aa   : > { %919 = vrcp.f32 %v370_v15 }
 0x4ad   : > { %v375_v16 = vpop.permute.xlu1 %374 }
 0x4ae   : > { %v380_v17 = vsel %vm257_vm2, %v375_v16, 0 }
 0x4af   : > { %833 = vmatpush3.bf16.msra.mxu0 %v380_v17 }
 0x4b0   : > { %844 = vmatprep.subr.bf16.mxu0 %v949_v0 }
 0x4b4   : > { %v920_v5 = vpop.eup %919 }
 0x4b5   : > { %v372_v18 = vmul.f32 %v920_v5, %v914_v1 }
 0x4b7   : > { %v373_v19 = vpack.c.bf16 %v372_v18, %v372_v18 }
 0x4b9   : > { %835 = vmatmul.mubr.msk.bf16.vlgmr.msra.gmra.mrb[4].mxu0 %vm193_vm1, %v373_v19  ;;  %v624_v20 = vpop.xlane.xlu0 %623 }
 0x4ba   : > { %846 = vmatprep.mubr.msk.bf16.mxu0 %vm950_vm0, %v949_v0 }
 0x4bd   : > { %v502_v21 = vpop.permute.xlu0 %501 }
 0x4be   : > { %v507_v13 = vsel %vm257_vm2, %v502_v21, 0 }
 0x4bf   : > { %845 = vmatpush3.bf16.msra.mxu0 %v507_v13 }
 0x4c0   : > { %856 = vmatprep.subr.bf16.mxu0 %v949_v0 }
 0x4de   : > { %v497_v22 = vpop.xlane.xlu1 %496 }
 0x4df   : > { %921 = vrcp.f32 %v497_v22 }
 0x4e0   : > { %923 = vrcp.f32 %v624_v20 }
 0x4e2   : > { %v629_v24 = vpop.permute.xlu1 %628 }
 0x4e3   : > { %v634_v26 = vsel %vm257_vm2, %v629_v24, 0 }
 0x4e9   : > { %v922_v23 = vpop.eup %921 }
 0x4ea   : > { %v499_v25 = vmul.f32 %v922_v23, %v918_v12  ;;  %v924_v28 = vpop.eup %923 }
 0x4eb   : > { %v626_v29 = vmul.f32 %v924_v28, %v916_v8 }
 0x4ec   : > { %v500_v27 = vpack.c.bf16 %v499_v25, %v499_v25 }
 0x4ed   : > { %v627_v30 = vpack.c.bf16 %v626_v29, %v626_v29 }
 0x4ee   : > { %847 = vmatmul.mubr.msk.bf16.vlgmr.msra.gmra.mrb[8].mxu0 %vm193_vm1, %v500_v27 }
 0x4ef   : > { %857 = vmatpush3.bf16.msra.mxu0 %v634_v26  ;;  %858 = vmatprep.mubr.msk.bf16.mxu0 %vm950_vm0, %v949_v0 }
 0x4f6   : > { %859 = vmatmul.mubr.msk.bf16.vlgmr.msra.gmra.mrb[12].mxu0 %vm193_vm1, %v627_v30 }
 0x58c   : > { %v416_v31 = vpop.f32.mrb[4].mxu0 }
 0x58d   : > { %v795_v32 = vpack.c.bf16 %v416_v31, %v416_v31  ;;  %v836_v33 = vpop.f32.mrb[5].mxu0 }
 0x58e   : > { %v419_v34 = vpop.f32.mrb[6].mxu0 }
 0x58f   : > { %426 = vrot.lane.b32.xlu1 %v795_v32, %s962_s6  ;;  %v837_v35 = vpop.f32.mrb[7].mxu0 }
 0x5c1   : > { %v543_v36 = vpop.f32.mrb[8].mxu0 }
 0x5c2   : > { %v796_v37 = vpack.c.bf16 %v543_v36, %v543_v36  ;;  %v848_v38 = vpop.f32.mrb[9].mxu0 }
 0x5c3   : > { %v546_v39 = vpop.f32.mrb[10].mxu0 }
 0x5c4   : > { %553 = vrot.lane.b32.xlu0 %v796_v37, %s963_s7  ;;  %v849_v0 = vpop.f32.mrb[11].mxu0 }
 0x5c9   : > { %v670_v40 = vpop.f32.mrb[12].mxu0 }
 0x5ca   : > { %v797_v41 = vpack.c.bf16 %v670_v40, %v670_v40  ;;  %v860_v42 = vpop.f32.mrb[13].mxu0 }
 0x5cb   : > { %v673_v43 = vpop.f32.mrb[14].mxu0 }
 0x5cc   : > { %680 = vrot.lane.b32.xlu1 %v797_v41, %s964_s8  ;;  %v861_v44 = vpop.f32.mrb[15].mxu0 }
 0x601   : > { %v427_v45 = vpop.permute.xlu1 %426 }
 0x602   : > { %430 = vst.msk [vmem:[%s1067_s30] sm:$0xf] %vm429_vm4, %v427_v45 }
 0x636   : > { %v554_v46 = vpop.permute.xlu0 %553 }
 0x637   : > { %557 = vst.msk [vmem:[%s1067_s30] sm:$0xf] %vm556_vm5, %v554_v46 }
 0x63e   : > { %v681_v47 = vpop.permute.xlu1 %680 }
 0x63f   : > { %684 = vst.msk [vmem:[%s1067_s30] sm:$0xf] %vm683_vm6, %v681_v47 }
 0x640 PF: > { %s12_s11 = sadd.s32 1, %s947_s11   ;;  %s1109_s9 = smov %s943_s10 }
 0x641   : > { %p9_p5 = scmp.ge.s32.totalorder %s12_s11, 4   ;;  %s1110_s10 = smov %s1112_s12 }
 0x643   :  { %11 = sbr.rel (!%p9_p5) target bundleno = 2 (0x2), region = 62 }

// kernel: bert_forward.16
= control target key start
LH: loop header
LB: loop body
LE: loop exit
PB: predicated region body
PF: predicated region fallthrough
CT: control target
= control target key end

     0   :  { %v152_v0 = vmov 0.0   ;;  %vm153_vm0 = vmmov 0   ;;  %vm45_vm1 = vcmask 261120   ;;  %vm116_vm2 = vcmask 519168   ;;  %s192_s1 = inlined_call_operand.vmem [shape: bf16[32,64], index: 1, kind: input, shape index: {}]   ;;  %s193_s0 = inlined_call_operand.vmem [shape: bf16[16,32], index: 0, kind: input, shape index: {}]   ;;  %s194_s2 = inlined_call_operand.vmem [shape: f32[1,64], index: 2, kind: input, shape index: {}]   ;;  %s195_s3 = inlined_call_operand.vmem [shape: bf16[16,64], index: 3, kind: output, shape index: {}]  }
   0x1   :  { %135 = vmatprep.subr.bf16.mxu0 %v152_v0  ;;  %v145_v1 = vld [vmem:[%s192_s1] sm:$0xff]   ;;  %139 = vmatprep.mubr.msk.bf16.mxu0 %vm153_vm0, %v152_v0  ;;  %v146_v2 = vld [vmem:[%s192_s1 + $0x8] sm:$0xff]  }
   0x2   :  { %136 = vmatpush3.bf16.msra.mxu0 %v145_v1  ;;  %v147_v3 = vld [vmem:[%s193_s0] sm:$0xff]  }
   0x3   :  { %137 = vmatprep.subr.bf16.mxu0 %v152_v0  ;;  %v123_v4 = vld [vmem:[%s194_s2] ss:$0 sm:$0xff] }
   0x6   :  { %138 = vmatpush3.bf16.msra.mxu0 %v146_v2 }
   0x9   :  { %140 = vmatmul.mubr.msk.bf16.vlgmr.msra.gmra.mrb[0].mxu0 %vm45_vm1, %v147_v3 }
  0xdc   :  { %v83_v5 = vpop.f32.mrb[0].mxu0 }
  0xdd   :  { %v84_v6 = vadd.f32 %v123_v4, %v83_v5  ;;  %v141_v7 = vpop.f32.mrb[1].mxu0 }
  0xde   :  { %v86_v8 = vpop.f32.mrb[2].mxu0 }
  0xdf   :  { %v92_v9 = vmul.f32 0.044715, %v84_v6  ;;  %v87_v10 = vadd.f32 %v123_v4, %v86_v8  ;;  %v142_v11 = vpop.f32.mrb[3].mxu0  ;;  %v90_v22 = vmul.f32 0.5, %v84_v6 }
  0xe1   :  { %v94_v12 = vmul.f32 %v92_v9, %v84_v6  ;;  %v93_v13 = vmul.f32 0.044715, %v87_v10  ;;  %v91_v26 = vmul.f32 0.5, %v87_v10 }
  0xe3   :  { %v96_v14 = vmul.f32 %v94_v12, %v84_v6  ;;  %v95_v15 = vmul.f32 %v93_v13, %v87_v10 }
  0xe5   :  { %v98_v16 = vadd.f32 %v96_v14, %v84_v6  ;;  %v97_v17 = vmul.f32 %v95_v15, %v87_v10 }
  0xe7   :  { %v100_v18 = vmul.f32 0.7978846, %v98_v16  ;;  %v99_v19 = vadd.f32 %v97_v17, %v87_v10 }
  0xe9   :  { %148 = vtanh.f32 %v100_v18  ;;  %v101_v20 = vmul.f32 0.7978846, %v99_v19 }
  0xeb   :  { %150 = vtanh.f32 %v101_v20 }
  0xf3   :  { %v149_v21 = vpop.eup %148 }
  0xf4   :  { %v104_v23 = vadd.f32 1.0, %v149_v21 }
  0xf5   :  { %v151_v24 = vpop.eup %150 }
  0xf6   :  { %v106_v25 = vmul.f32 %v104_v23, %v90_v22  ;;  %v105_v27 = vadd.f32 1.0, %v151_v24 }
  0xf8   :  { %v130_v28 = vpack.c.bf16 %v106_v25, %v106_v25  ;;  %v107_v29 = vmul.f32 %v105_v27, %v91_v26 }
  0xfa   :  { %117 = vst.msk [vmem:[%s195_s3] sm:$0xf] %vm116_vm2, %v130_v28  ;;  %v131_v30 = vpack.c.bf16 %v107_v29, %v107_v29 }
  0xfc   :  { %118 = vst.msk [vmem:[%s195_s3 + $0x4] sm:$0xf] %vm116_vm2, %v131_v30 }

// kernel: bert_forward.17
= control target key start
LH: loop header
LB: loop body
LE: loop exit
PB: predicated region body
PF: predicated region fallthrough
CT: control target
= control target key end

     0   :  { %v227_v0 = vmov 0.0   ;;  %vm228_vm0 = vmmov 0   ;;  %vm70_vm1 = vcmask 523264   ;;  %vm121_vm2 = vcmask 261120   ;;  %s301_s1 = inlined_call_operand.vmem [shape: bf16[64,32], index: 1, kind: input, shape index: {}]   ;;  %s302_s0 = inlined_call_operand.vmem [shape: bf16[16,64], index: 0, kind: input, shape index: {}]   ;;  %s303_s3 = inlined_call_operand.vmem [shape: bf16[16,32], index: 3, kind: input, shape index: {}]   ;;  %s304_s2 = inlined_call_operand.vmem [shape: f32[1,32], index: 2, kind: input, shape index: {}]   ;;  %s305_s4 = inlined_call_operand.vmem [shape: f32[1,32], index: 4, kind: input, shape index: {}]   ;;  %s306_s5 = inlined_call_operand.vmem [shape: f32[1,32], index: 5, kind: input, shape index: {}]   ;;  %s307_s6 = inlined_call_operand.vmem [shape: bf16[16,32], index: 6, kind: output, shape index: {}]  }
   0x1   :  { %204 = vmatprep.subr.bf16.mxu0 %v227_v0  ;;  %v218_v1 = vld [vmem:[%s301_s1] sm:$0xff]   ;;  %212 = vmatprep.mubr.msk.bf16.mxu0 %vm228_vm0, %v227_v0  ;;  %v219_v2 = vld [vmem:[%s301_s1 + $0x8] sm:$0xff]   ;;  %v220_v3 = vld [vmem:[%s301_s1 + $0x10] sm:$0xff]   ;;  %vm175_vm3 = vcmask 257024  }
   0x2   :  { %205 = vmatpush3.bf16.msra.mxu0 %v218_v1  ;;  %v221_v4 = vld [vmem:[%s301_s1 + $0x18] sm:$0xff]   ;;  %v222_v5 = vld [vmem:[%s302_s0] sm:$0xff]  }
   0x3   :  { %206 = vmatprep.subr.bf16.mxu0 %v227_v0  ;;  %v196_v6 = vld [vmem:[%s303_s3] sm:$0xff]  }
   0x4   :  { %v182_v7 = vld [vmem:[%s304_s2] ss:$0 sm:$0xff]  ;;  %v197_v8 = vunpack.c.l.bf16 %v196_v6  ;;  %v198_v12 = vunpack.c.h.bf16 %v196_v6 }
   0x5   :  { %v189_v37 = vld [vmem:[%s305_s4] ss:$0 sm:$0xff] }
   0x6   :  { %207 = vmatpush3.bf16.msra.mxu0 %v219_v2  ;;  %v190_v39 = vld [vmem:[%s306_s5] ss:$0 sm:$0xff] }
   0x7   :  { %208 = vmatprep.subr.bf16.mxu0 %v227_v0 }
   0xa   :  { %209 = vmatpush3.bf16.msra.mxu0 %v220_v3 }
   0xb   :  { %210 = vmatprep.subr.bf16.mxu0 %v227_v0 }
   0xe   :  { %211 = vmatpush3.bf16.msra.mxu0 %v221_v4 }
  0x11   :  { %213 = vmatmul.mubr.msk.bf16.vlgmr.msra.gmra.mrb[0].mxu0 %vm70_vm1, %v222_v5 }
  0xe4   :  { %v108_v9 = vpop.f32.mrb[0].mxu0 }
  0xe5   :  { %v109_v10 = vadd.f32 %v182_v7, %v108_v9  ;;  %v214_v11 = vpop.f32.mrb[1].mxu0 }
  0xe6   :  { %v111_v13 = vpop.f32.mrb[2].mxu0 }
  0xe7   :  { %v112_v14 = vadd.f32 %v182_v7, %v111_v13  ;;  %v215_v15 = vpop.f32.mrb[3].mxu0  ;;  %v119_v16 = vadd.f32 %v197_v8, %v109_v10 }
  0xe9   :  { %v122_v17 = vsel %vm121_vm2, %v119_v16, 0.0  ;;  %v120_v18 = vadd.f32 %v198_v12, %v112_v14 }
  0xea   :  { %123 = vadd.xlane.f32.xlu0 %v122_v17 }
  0xeb   :  { %v125_v19 = vsel %vm121_vm2, %v120_v18, 0.0 }
  0xee   :  { %126 = vadd.xlane.f32.xlu0 %v125_v19 }
 0x177   :  { %v124_v20 = vpop.xlane.xlu0 %123 }
 0x178   :  { %v129_v21 = vmul.f32 0.03125, %v124_v20 }
 0x17a   :  { %v131_v22 = vsub.f32 %v119_v16, %v129_v21 }
 0x17b   :  { %v127_v23 = vpop.xlane.xlu0 %126 }
 0x17c   :  { %v130_v24 = vmul.f32 0.03125, %v127_v23  ;;  %v133_v25 = vmul.f32 %v131_v22, %v131_v22 }
 0x17e   :  { %v132_v26 = vsub.f32 %v120_v18, %v130_v24  ;;  %v135_v27 = vsel %vm121_vm2, %v133_v25, 0.0 }
 0x17f   :  { %136 = vadd.xlane.f32.xlu1 %v135_v27 }
 0x180   :  { %v134_v28 = vmul.f32 %v132_v26, %v132_v26 }
 0x182   :  { %v138_v29 = vsel %vm121_vm2, %v134_v28, 0.0 }
 0x183   :  { %139 = vadd.xlane.f32.xlu1 %v138_v29 }
 0x20c   :  { %v137_v30 = vpop.xlane.xlu1 %136 }
 0x20d   :  { %v141_v31 = vmul.f32 0.03125, %v137_v30 }
 0x20f   :  { %v143_v32 = vadd.f32 1e-12, %v141_v31 }
 0x210   :  { %v140_v33 = vpop.xlane.xlu1 %139 }
 0x211   :  { %223 = vrsqrt.f32 %v143_v32  ;;  %v142_v34 = vmul.f32 0.03125, %v140_v33 }
 0x213   :  { %v144_v35 = vadd.f32 1e-12, %v142_v34 }
 0x215   :  { %225 = vrsqrt.f32 %v144_v35 }
 0x21b   :  { %v224_v36 = vpop.eup %223 }
 0x21c   :  { %v147_v38 = vmul.f32 %v224_v36, %v131_v22 }
 0x21e   :  { %v156_v40 = vmul.f32 %v189_v37, %v147_v38 }
 0x21f   :  { %v226_v41 = vpop.eup %225 }
 0x220   :  { %v165_v42 = vadd.f32 %v190_v39, %v156_v40  ;;  %v148_v43 = vmul.f32 %v226_v41, %v132_v26 }
 0x222   :  { %v193_v44 = vpack.c.bf16 %v165_v42, %v165_v42  ;;  %v157_v45 = vmul.f32 %v189_v37, %v148_v43 }
 0x224   :  { %176 = vst.msk [vmem:[%s307_s6] sm:$0xf] %vm175_vm3, %v193_v44  ;;  %v166_v46 = vadd.f32 %v190_v39, %v157_v45 }
 0x226   :  { %v194_v47 = vpack.c.bf16 %v166_v46, %v166_v46 }
 0x228   :  { %177 = vst.msk [vmem:[%s307_s6 + $0x4] sm:$0xf] %vm175_vm3, %v194_v47 }

// kernel: bert_forward.23
= control target key start
LH: loop header
LB: loop body
LE: loop exit
PB: predicated region body
PF: predicated region fallthrough
CT: control target
= control target key end

     0   :  { %v237_v1 = vmov 0.0   ;;  %vm238_vm0 = vmmov 0   ;;  %s305_s0 = inlined_call_operand.vmem [shape: bf16[2,32], index: 0, kind: input, shape index: {}]   ;;  %s306_s1 = inlined_call_operand.vmem [shape: bf16[32,32], index: 1, kind: input, shape index: {}]   ;;  %s307_s2 = inlined_call_operand.vmem [shape: f32[1,32], index: 2, kind: input, shape index: {}]   ;;  %s308_s3 = inlined_call_operand.vmem [shape: bf16[32,2], index: 3, kind: input, shape index: {}]   ;;  %s309_s4 = inlined_call_operand.vmem [shape: f32[1,2], index: 4, kind: input, shape index: {}]   ;;  %s310_s5 = inlined_call_operand.hbm [shape: f32[2,2], index: 5, kind: output, shape index: {}]  }
   0x1   :  { %v207_v0 = vld [vmem:[%s306_s1] sm:$0xff]   ;;  %188 = vmatprep.subr.bf16.mxu0 %v237_v1  ;;  %196 = vmatprep.subr.bf16.mxu1 %v237_v1  ;;  %v208_v2 = vld [vmem:[%s306_s1 + $0x8] sm:$0xff]  }
   0x2   :  { %189 = vmatpush3.bf16.msra.mxu0 %v207_v0  ;;  %192 = vmatprep.mubr.msk.bf16.mxu0 %vm238_vm0, %v237_v1 }
   0x3   :  { %190 = vmatprep.subr.bf16.mxu0 %v237_v1  ;;  %200 = vmatprep.mubr.msk.bf16.mxu1 %vm238_vm0, %v237_v1 }
   0x4   :  { %10 = vsyncpa [#allocation3], 0  ;;  %v22_v3 = vld [vmem:[%s305_s0] sm:$0x1]  ;;  %vm46_vm1 = vcmask 261120   ;;  %v210_v5 = vld [vmem:[%s308_s3 + $0x8] sm:$0xff]  }
   0x5   :  { %v209_v4 = vld [vmem:[%s308_s3] sm:$0xff]   ;;  %s239_s3 = smov [#allocation2]   ;;  %vm158_vm2 = vcmask 9216  }
   0x6   :  { %191 = vmatpush3.bf16.msra.mxu0 %v208_v2  ;;  %197 = vmatpush3.bf16.msra.mxu1 %v209_v4  ;;  %v174_v6 = vld [vmem:[%s307_s2] ss:$0 sm:$0xff]  ;;  %s166_s30 = sshll.u32 %s239_s3, 4  ;;  %s167_s30 = int_to_ptr.vmem [resolvable:$true] %s166_s30 }
   0x7   :  { %198 = vmatprep.subr.bf16.mxu1 %v237_v1  ;;  %v178_v14 = vld [vmem:[%s309_s4] ss:$0 sm:$0xff]  ;;  %s213_s2 = scalar_lea.vmem %s167_s30, 32  ;;  %p218_p1 = scmp.lt.s32.totalorder %s167_s30, %s167_s30 }
   0x8   :  { %p214_p0 = scmp.ne.s32.totalorder %s167_s30, %s213_s2  ;;  %p219_p2 = scmp.lt.s32.totalorder %s213_s2, %s213_s2 }
   0x9   :  { %193 = vmatmul.mubr.msk.bf16.vlgmr.msra.gmra.mrb[0].mxu0 %vm46_vm1, %v22_v3 }
   0xa   :  { %199 = vmatpush3.bf16.msra.mxu1 %v210_v5  ;;  %p220_p3 = por %p219_p2, %p218_p1 }
   0xc   :  { %p221_p4 = pnand %p220_p3, %p214_p0 }
  0xdc   :  { %v84_v7 = vpop.f32.mrb[0].mxu0 }
  0xdd   :  { %v85_v8 = vadd.f32 %v174_v6, %v84_v7  ;;  %v194_v9 = vpop.f32.mrb[1].mxu0 }
  0xde   :  { %v87_v10 = vpop.f32.mrb[2].mxu0 }
  0xdf   :  { %211 = vtanh.f32 %v85_v8  ;;  %v195_v11 = vpop.f32.mrb[3].mxu0 }
  0xe9   :  { %v212_v12 = vpop.eup %211 }
  0xea   :  { %v91_v13 = vpack.c.bf16 %v212_v12, %v212_v12 }
  0xec   :  { %201 = vmatmul.mubr.msk.bf16.vlgmr.msra.gmra.mrb[0].mxu1 %vm46_vm1, %v91_v13 }
 0x1bf   :  { %v152_v15 = vpop.f32.mrb[0].mxu1 }
 0x1c0   :  { %v153_v16 = vadd.f32 %v178_v14, %v152_v15  ;;  %v202_v17 = vpop.f32.mrb[1].mxu1 }
 0x1c1   :  { %v155_v18 = vpop.f32.mrb[2].mxu1 }
 0x1c2   :  { %v203_v19 = vpop.f32.mrb[3].mxu1  ;;  %159 = vst.msk [vmem:[#allocation2] sm:$0x3] %vm158_vm2, %v153_v16 }
 0x1c3   :  { %224 = shalt.err (!%p221_p4)
}
 0x1c4   :  { %s225_s4 = scalar_lea.hbm %s310_s5, 32 }
 0x1c5   :  { %p226_p5 = scmp.ne.s32.totalorder %s310_s5, %s225_s4  ;;  %p229_p6 = scmp.lt.u32.totalorder %s225_s4, %s310_s5 }
 0x1c7   :  { %p231_p7 = pnand %p229_p6, %p226_p5 }
 0x1c9   :  { %234 = shalt.err (!%p231_p7)
}
 0x1ca   :  { %169 = dma.vmem_to_hbm [thread:$0]  %s167_s30, 32, %s310_s5, [#allocation3]  }
 0x1cb   :  { %235 = dma.done.wait [#allocation3], 32  }
 0x1cc   :  { %236 = vsyncadd [#allocation3], 4294967264 }
 0x1cd   :  { %173 = vsyncpa [#allocation3], 1 }

</bundles_post_ra>
